<compile_context>
chip_gen: v5e
topology: v5e:2x2
jax: 0.10.0
libtpu: 0.0.40
codegen_flags: <defaults>
</compile_context>

<pallas_src>
import functools

import jax
import jax.numpy as jnp
from jax import lax
from jax.experimental import pallas as pl
from jax.experimental.pallas import tpu as pltpu


# ----------------------------- Pallas kernel ------------------------------ #
def _textcnn_attn_kernel(n_head, H,
                         x_ref,                 # (M, 4E) bf16 im2col rows (M = Bblk*Lpad)
                         s_ref,                 # (1, Bblk, M) f32 segment-pool matrix
                         mb_ref,                # (M, M) f32 additive score mask (0 / -1e9)
                         wc_ref, bc_ref,        # (4E, H) bf16, (1, H) f32
                         wkt_ref, bk_ref,       # (H, H) bf16, (1, H) f32
                         wqf_ref, bsc_ref,      # (H, nh) bf16, (1, nh) f32  (folded q-score)
                         wkfT_ref,              # (nh, H) bf16               (folded k-score^T)
                         wpe_ref, bp_ref,       # (H, nh*H) bf16, (1, H) f32 (expanded V->proj)
                         wfct_ref, bfc_ref,     # (H, Ppad) f32, (1, Ppad) f32
                         out_ref):              # (1, Bblk, Ppad) f32
    f32 = jnp.float32
    bf16 = jnp.bfloat16

    # ---- Conv1d(E->H, k=4, pad=1) + ReLU as ONE im2col matmul over all stacked rows ----
    h = jnp.dot(x_ref[...], wc_ref[...], preferred_element_type=f32) + bc_ref[...]
    h = jnp.maximum(h, 0.0)                                                  # (M, H) f32
    h_b = h.astype(bf16)

    # ---- V projection (attention w_k output) ----
    kx = jnp.dot(h_b, wkt_ref[...], preferred_element_type=f32) + bk_ref[...]   # (M, H)

    # ---- folded per-head mlp-score scalars (Wq/Wk and score weights pre-multiplied) ----
    qs = jnp.dot(h_b, wqf_ref[...], preferred_element_type=f32) + bsc_ref[...]  # (M, nh)
    ks_t = lax.dot_general(wkfT_ref[...], h_b, (((1,), (1,)), ((), ())),
                           preferred_element_type=f32)                          # (nh, M)

    # ---- per-head V pre-projected through the output projection: one N = nh*H matmul ----
    vp = jnp.dot(kx.astype(bf16), wpe_ref[...],
                 preferred_element_type=f32).astype(bf16)                       # (M, nh*H)

    mbias = mb_ref[...]                                                         # (M, M)
    M = qs.shape[0]
    acc = jnp.zeros((M, H), f32)
    for j in range(n_head):                                  # static 8-iteration unroll
        # score over ALL examples of the block at once; mask kills cross-example & pad keys
        sc = jnp.tanh(qs[:, j:j + 1] + ks_t[j:j + 1, :]) + mbias                # (M, M)
        m = jnp.max(sc, axis=-1, keepdims=True)
        e = jnp.exp(sc - m)
        p = e * pl.reciprocal(jnp.sum(e, axis=-1, keepdims=True), approx=True)
        acc = acc + jnp.dot(p.astype(bf16), vp[:, j * H:(j + 1) * H],
                            preferred_element_type=f32)                          # (M, H)

    attn = acc + bp_ref[...]                                                     # (M, H)

    # ---- length-normalized sum-pool of each example's real rows: ONE matmul ----
    pooled = jnp.dot(s_ref[0], attn, preferred_element_type=f32)                 # (Bblk, H)

    out = jnp.dot(pooled, wfct_ref[...], preferred_element_type=f32) + bfc_ref[...]
    out_ref[...] = out[None, :, :]                                               # (1, Bblk, Ppad)


# ------------------------------- wrapper ---------------------------------- #
def textcnn_attn_forward(text_indices, embedding_matrix, raw, n_head=8, block_b=None):
    f32, bf16 = jnp.float32, jnp.bfloat16
    B, L = text_indices.shape
    E = embedding_matrix.shape[1]
    H = raw["conv_b"].shape[0]
    P = raw["bfc"].shape[0]
    hd = H // n_head
    Kc = 4
    Lout = L - 1                        # Conv1d(k=4, padding=1) output length
    Lpad = ((Lout + 7) // 8) * 8        # sublane-aligned rows per example
    Ppad = ((P + 127) // 128) * 128     # lane-dense output width

    # ----- plain-JAX glue: text_len, embedding gather, zero-pad, im2col -----
    text_len = jnp.sum(text_indices != 0, axis=-1).astype(f32)
    inv_len = 1.0 / jnp.maximum(text_len, 1.0)                      # guard all-pad rows

    emb = embedding_matrix[text_indices]                            # (B, L, E)
    x_pad = jnp.pad(emb, ((0, 0), (1, 1), (0, 0)))                  # (B, L+2, E)
    x_im2col = jnp.concatenate([x_pad[:, k:k + Lout, :] for k in range(Kc)], axis=-1)
    x_im2col = jnp.pad(x_im2col, ((0, 0), (0, Lpad - Lout), (0, 0)))
    x_flat = x_im2col.reshape(B * Lpad, Kc * E).astype(bf16)        # (B*Lpad, 4E) bf16
    # TODO(synk): at large B/L/E, stream the (Bblk*(L+2), E) embedding block and build the
    # 4E contraction in-kernel instead of materializing the 4x-inflated im2col in HBM.

    # ----- grid blocking: ~256 stacked rows per step (fewest fat steps). -----
    # On v7x pass block_b explicitly so the grid has exactly 2 steps (2 TensorCores).
    if block_b is None:
        target_rows = 256
        divisors = [d for d in range(1, B + 1) if B % d == 0]
        fitting = [d for d in divisors if d * Lpad <= target_rows]
        block_b = max(fitting) if fitting else 1
    assert B % block_b == 0
    nblk = B // block_b
    M = block_b * Lpad

    # segment-pooling matrix: S[blk, b, b*Lpad + q] = 1/len  for real rows, else 0
    row_valid = (jnp.arange(Lpad) < Lout).astype(f32)
    eye_bb = jnp.eye(block_b, dtype=f32)
    s_core = eye_bb[:, :, None] * row_valid[None, None, :]              # (bb, bb, Lpad)
    s_mat = (inv_len.reshape(nblk, block_b, 1, 1) * s_core[None]).reshape(nblk, block_b, M)

    # additive score mask: 0 for same-example real keys, -1e9 elsewhere
    r = jnp.arange(M)
    same_seg = (r[:, None] // Lpad) == (r[None, :] // Lpad)
    key_real = (r[None, :] % Lpad) < Lout
    mask_bias = jnp.where(same_seg & key_real, 0.0, -1e9).astype(f32)   # (M, M)

    # ----- fold / expand weights (trace-time algebra) -----
    wconv = jnp.transpose(raw["conv_w"], (2, 1, 0)).reshape(Kc * E, H).astype(bf16)
    bc = raw["conv_b"][None, :].astype(f32)
    wkt = raw["wk"].T.astype(bf16)
    bk = raw["bk"][None, :].astype(f32)

    eye_h = jnp.eye(n_head, dtype=f32)
    wqs = jnp.kron(eye_h, raw["w_attn"][hd:][:, None])                  # (H, nh) block-diag q part
    wks = jnp.kron(eye_h, raw["w_attn"][:hd][:, None])                  # (H, nh) block-diag k part
    wq_fold = (raw["wq"].T @ wqs).astype(bf16)                          # (H, nh)
    wk_foldT = (raw["wk"].T @ wks).T.astype(bf16)                       # (nh, H)
    bscore = (raw["bq"][None, :] @ wqs + raw["bk"][None, :] @ wks).astype(f32)  # (1, nh)

    wpt = raw["wp"].T                                                   # (H_in, H_out)
    wp_exp = jnp.zeros((H, n_head * H), f32)
    for j in range(n_head):
        wp_exp = wp_exp.at[j * hd:(j + 1) * hd, j * H:(j + 1) * H].set(
            wpt[j * hd:(j + 1) * hd, :])
    wp_exp = wp_exp.astype(bf16)                                        # (H, nh*H)
    bp = raw["bp"][None, :].astype(f32)
    wfct = jnp.pad(raw["wfc"].T, ((0, 0), (0, Ppad - P))).astype(f32)   # (H, Ppad)
    bfc = jnp.pad(raw["bfc"][None, :], ((0, 0), (0, Ppad - P))).astype(f32)

    kern = functools.partial(_textcnn_attn_kernel, n_head, H)
    rep = lambda b: (0, 0)
    in_specs = [
        pl.BlockSpec((M, Kc * E), lambda b: (b, 0)),                    # im2col rows
        pl.BlockSpec((1, block_b, M), lambda b: (b, 0, 0)),             # pooling matrix
        pl.BlockSpec((M, M), rep),                                      # additive score mask
        pl.BlockSpec((Kc * E, H), rep), pl.BlockSpec((1, H), rep),      # conv
        pl.BlockSpec((H, H), rep), pl.BlockSpec((1, H), rep),           # Wk^T / bk
        pl.BlockSpec((H, n_head), rep), pl.BlockSpec((1, n_head), rep), # folded q score
        pl.BlockSpec((n_head, H), rep),                                 # folded k score^T
        pl.BlockSpec((H, n_head * H), rep), pl.BlockSpec((1, H), rep),  # expanded proj / bp
        pl.BlockSpec((H, Ppad), rep), pl.BlockSpec((1, Ppad), rep),     # fc (lane-padded)
    ]
    out = pl.pallas_call(
        kern,
        grid_spec=pltpu.PrefetchScalarGridSpec(
            num_scalar_prefetch=0,
            grid=(nblk,),
            in_specs=in_specs,
            out_specs=pl.BlockSpec((1, block_b, Ppad), lambda b: (b, 0, 0)),
        ),
        out_shape=jax.ShapeDtypeStruct((nblk, block_b, Ppad), f32),
        compiler_params=pltpu.CompilerParams(dimension_semantics=("parallel",)),
    )(x_flat, s_mat, mask_bias, wconv, bc, wkt, bk,
      wq_fold, bscore, wk_foldT, wp_exp, bp, wfct, bfc)
    return out.reshape(B, Ppad)[:, :P]


# ------------------------ deterministic parameters ------------------------ #
def init_params(key, E, H, P, n_head):
    hd = H // n_head
    ks = jax.random.split(key, 11)
    s = 0.1
    return dict(
        conv_w=jax.random.normal(ks[0], (H, E, 4)) * s,    # PyTorch Conv1d (out, in, k)
        conv_b=jax.random.normal(ks[1], (H,)) * s,
        wq=jax.random.normal(ks[2], (H, H)) * s,           # nn.Linear (out, in)
        bq=jax.random.normal(ks[3], (H,)) * s,
        wk=jax.random.normal(ks[4], (H, H)) * s,
        bk=jax.random.normal(ks[5], (H,)) * s,
        w_attn=jax.random.normal(ks[6], (2 * hd,)) * s,    # mlp score weight
        wp=jax.random.normal(ks[7], (H, H)) * s,
        bp=jax.random.normal(ks[8], (H,)) * s,
        wfc=jax.random.normal(ks[9], (P, H)) * s,
        bfc=jax.random.normal(ks[10], (P,)) * s,
    )


# --------------------------- pure-JAX reference ---------------------------- #
def reference_forward(text_indices, embedding_matrix, raw, n_head):
    B, L = text_indices.shape
    H = raw["conv_b"].shape[0]
    hd = H // n_head
    text_len = jnp.sum(text_indices != 0, axis=-1).astype(jnp.float32)
    emb = embedding_matrix[text_indices]                                  # (B, L, E)
    x = jnp.pad(jnp.transpose(emb, (0, 2, 1)), ((0, 0), (0, 0), (1, 1)))  # (B, E, L+2)
    Lout = L - 1
    conv = jnp.zeros((B, H, Lout))
    for k in range(4):
        conv = conv + jnp.einsum("bel,he->bhl", x[:, :, k:k + Lout], raw["conv_w"][:, :, k])
    h = jnp.maximum(conv + raw["conv_b"][None, :, None], 0.0)
    h = jnp.transpose(h, (0, 2, 1))                                       # (B, Lout, H)
    qx = h @ raw["wq"].T + raw["bq"]
    kx = h @ raw["wk"].T + raw["bk"]
    outs = []
    for hh in range(n_head):
        qh = qx[..., hh * hd:(hh + 1) * hd]
        kh = kx[..., hh * hd:(hh + 1) * hd]
        qs = qh @ raw["w_attn"][hd:]
        ks = kh @ raw["w_attn"][:hd]
        score = jnp.tanh(ks[:, None, :] + qs[:, :, None])                 # (B, q, k)
        score = jax.nn.softmax(score, axis=-1)
        outs.append(jnp.einsum("bqk,bkd->bqd", score, kh))
    attn = jnp.concatenate(outs, axis=-1) @ raw["wp"].T + raw["bp"]
    pooled = jnp.sum(attn, axis=1) / text_len[:, None]
    return pooled @ raw["wfc"].T + raw["bfc"]


# ---------------------------------- main ----------------------------------- #
if __name__ == "__main__":
    B, L = 2, 16
    vocab, E, H, P, n_head = 32, 32, 32, 3, 8

    key = jax.random.PRNGKey(0)
    k_emb, k_idx, k_par = jax.random.split(key, 3)

    embedding_matrix = jax.random.normal(k_emb, (vocab, E), jnp.float32) * 0.5
    text_indices = jax.random.randint(k_idx, (B, L), 1, vocab, dtype=jnp.int32)
    text_indices = text_indices.at[0, 12:].set(0)   # batch 0 has padding -> text_len = 12

    raw = init_params(k_par, E, H, P, n_head)

    out = textcnn_attn_forward(text_indices, embedding_matrix, raw, n_head=n_head)
    out = jax.block_until_ready(out)

    ref = reference_forward(text_indices, embedding_matrix, raw, n_head)
    assert out.shape == (B, P)
    assert jnp.allclose(out, ref, rtol=2e-2, atol=2e-2), (out, ref)
    print("KERNEL_OK")
</pallas_src>

<mosaic_0001>
module attributes {stable_mosaic.version = 11 : i64} {
  func.func @_textcnn_attn_kernel(%arg0: i32, %arg1: memref<32x128xbf16, #tpu.memory_space<vmem>>, %arg2: memref<1x2x32xf32, #tpu.memory_space<vmem>>, %arg3: memref<32x32xf32, #tpu.memory_space<vmem>>, %arg4: memref<128x32xbf16, #tpu.memory_space<vmem>>, %arg5: memref<1x32xf32, #tpu.memory_space<vmem>>, %arg6: memref<32x32xbf16, #tpu.memory_space<vmem>>, %arg7: memref<1x32xf32, #tpu.memory_space<vmem>>, %arg8: memref<32x8xbf16, #tpu.memory_space<vmem>>, %arg9: memref<1x8xf32, #tpu.memory_space<vmem>>, %arg10: memref<8x32xbf16, #tpu.memory_space<vmem>>, %arg11: memref<32x256xbf16, #tpu.memory_space<vmem>>, %arg12: memref<1x32xf32, #tpu.memory_space<vmem>>, %arg13: memref<32x128xf32, #tpu.memory_space<vmem>>, %arg14: memref<1x128xf32, #tpu.memory_space<vmem>>, %arg15: memref<1x2x128xf32, #tpu.memory_space<vmem>>) attributes {dimension_semantics = [#tpu.dimension_semantics<parallel>], iteration_bounds = array<i64: 1>, scalar_prefetch = 0 : i64, scratch_operands = 0 : i64, tpu.core_type = #tpu.core_type<tc>, window_params = [{transform_indices = @transform_0, window_bounds = array<i64: 32, 128>}, {transform_indices = @transform_1, window_bounds = array<i64: 1, 2, 32>}, {pipeline_mode = #tpu.pipeline_mode<synchronous>, transform_indices = @transform_2, window_bounds = array<i64: 32, 32>}, {pipeline_mode = #tpu.pipeline_mode<synchronous>, transform_indices = @transform_3, window_bounds = array<i64: 128, 32>}, {pipeline_mode = #tpu.pipeline_mode<synchronous>, transform_indices = @transform_4, window_bounds = array<i64: 1, 32>}, {pipeline_mode = #tpu.pipeline_mode<synchronous>, transform_indices = @transform_5, window_bounds = array<i64: 32, 32>}, {pipeline_mode = #tpu.pipeline_mode<synchronous>, transform_indices = @transform_6, window_bounds = array<i64: 1, 32>}, {pipeline_mode = #tpu.pipeline_mode<synchronous>, transform_indices = @transform_7, window_bounds = array<i64: 32, 8>}, {pipeline_mode = #tpu.pipeline_mode<synchronous>, transform_indices = @transform_8, window_bounds = array<i64: 1, 8>}, {pipeline_mode = #tpu.pipeline_mode<synchronous>, transform_indices = @transform_9, window_bounds = array<i64: 8, 32>}, {pipeline_mode = #tpu.pipeline_mode<synchronous>, transform_indices = @transform_10, window_bounds = array<i64: 32, 256>}, {pipeline_mode = #tpu.pipeline_mode<synchronous>, transform_indices = @transform_11, window_bounds = array<i64: 1, 32>}, {pipeline_mode = #tpu.pipeline_mode<synchronous>, transform_indices = @transform_12, window_bounds = array<i64: 32, 128>}, {pipeline_mode = #tpu.pipeline_mode<synchronous>, transform_indices = @transform_13, window_bounds = array<i64: 1, 128>}, {transform_indices = @transform_14, window_bounds = array<i64: 1, 2, 128>}]} {
    %c0 = arith.constant 0 : index
    %c0_0 = arith.constant 0 : index
    %0 = vector.load %arg1[%c0, %c0_0] : memref<32x128xbf16, #tpu.memory_space<vmem>>, vector<32x128xbf16>
    %c0_1 = arith.constant 0 : index
    %c0_2 = arith.constant 0 : index
    %1 = vector.load %arg4[%c0_1, %c0_2] : memref<128x32xbf16, #tpu.memory_space<vmem>>, vector<128x32xbf16>
    %cst = arith.constant dense<0.000000e+00> : vector<32x32xf32>
    %2 = tpu.matmul %0, %1, %cst {dimension_numbers = #tpu.dot_dimension_numbers<[1], [0], [0], [1], [0, 0, 1, 1], [], []>} : vector<32x128xbf16>, vector<128x32xbf16>, vector<32x32xf32> -> vector<32x32xf32>
    %c0_3 = arith.constant 0 : index
    %c0_4 = arith.constant 0 : index
    %3 = vector.load %arg5[%c0_3, %c0_4] : memref<1x32xf32, #tpu.memory_space<vmem>>, vector<1x32xf32>
    %4 = vector.broadcast %3 : vector<1x32xf32> to vector<32x32xf32>
    %5 = arith.addf %2, %4 : vector<32x32xf32>
    %cst_5 = arith.constant 0.000000e+00 : f32
    %6 = vector.broadcast %cst_5 : f32 to vector<32x32xf32>
    %7 = arith.maximumf %5, %6 : vector<32x32xf32>
    %8 = arith.truncf %7 : vector<32x32xf32> to vector<32x32xbf16>
    %c0_6 = arith.constant 0 : index
    %c0_7 = arith.constant 0 : index
    %9 = vector.load %arg6[%c0_6, %c0_7] : memref<32x32xbf16, #tpu.memory_space<vmem>>, vector<32x32xbf16>
    %cst_8 = arith.constant dense<0.000000e+00> : vector<32x32xf32>
    %10 = tpu.matmul %8, %9, %cst_8 {dimension_numbers = #tpu.dot_dimension_numbers<[1], [0], [0], [1], [0, 0, 1, 1], [], []>} : vector<32x32xbf16>, vector<32x32xbf16>, vector<32x32xf32> -> vector<32x32xf32>
    %c0_9 = arith.constant 0 : index
    %c0_10 = arith.constant 0 : index
    %11 = vector.load %arg7[%c0_9, %c0_10] : memref<1x32xf32, #tpu.memory_space<vmem>>, vector<1x32xf32>
    %12 = vector.broadcast %11 : vector<1x32xf32> to vector<32x32xf32>
    %13 = arith.addf %10, %12 : vector<32x32xf32>
    %c0_11 = arith.constant 0 : index
    %c0_12 = arith.constant 0 : index
    %14 = vector.load %arg8[%c0_11, %c0_12] : memref<32x8xbf16, #tpu.memory_space<vmem>>, vector<32x8xbf16>
    %cst_13 = arith.constant dense<0.000000e+00> : vector<32x8xf32>
    %15 = tpu.matmul %8, %14, %cst_13 {dimension_numbers = #tpu.dot_dimension_numbers<[1], [0], [0], [1], [0, 0, 1, 1], [], []>} : vector<32x32xbf16>, vector<32x8xbf16>, vector<32x8xf32> -> vector<32x8xf32>
    %c0_14 = arith.constant 0 : index
    %c0_15 = arith.constant 0 : index
    %16 = vector.load %arg9[%c0_14, %c0_15] : memref<1x8xf32, #tpu.memory_space<vmem>>, vector<1x8xf32>
    %17 = vector.broadcast %16 : vector<1x8xf32> to vector<32x8xf32>
    %18 = arith.addf %15, %17 : vector<32x8xf32>
    %c0_16 = arith.constant 0 : index
    %c0_17 = arith.constant 0 : index
    %19 = vector.load %arg10[%c0_16, %c0_17] : memref<8x32xbf16, #tpu.memory_space<vmem>>, vector<8x32xbf16>
    %cst_18 = arith.constant dense<0.000000e+00> : vector<8x32xf32>
    %20 = tpu.matmul %19, %8, %cst_18 {dimension_numbers = #tpu.dot_dimension_numbers<[1], [1], [0], [0], [0, 0, 1, 0], [], []>} : vector<8x32xbf16>, vector<32x32xbf16>, vector<8x32xf32> -> vector<8x32xf32>
    %21 = arith.truncf %13 : vector<32x32xf32> to vector<32x32xbf16>
    %c0_19 = arith.constant 0 : index
    %c0_20 = arith.constant 0 : index
    %22 = vector.load %arg11[%c0_19, %c0_20] : memref<32x256xbf16, #tpu.memory_space<vmem>>, vector<32x256xbf16>
    %cst_21 = arith.constant dense<0.000000e+00> : vector<32x256xf32>
    %23 = tpu.matmul %21, %22, %cst_21 {dimension_numbers = #tpu.dot_dimension_numbers<[1], [0], [0], [1], [0, 0, 1, 1], [], []>} : vector<32x32xbf16>, vector<32x256xbf16>, vector<32x256xf32> -> vector<32x256xf32>
    %24 = arith.truncf %23 : vector<32x256xf32> to vector<32x256xbf16>
    %c0_22 = arith.constant 0 : index
    %c0_23 = arith.constant 0 : index
    %25 = vector.load %arg3[%c0_22, %c0_23] : memref<32x32xf32, #tpu.memory_space<vmem>>, vector<32x32xf32>
    %cst_24 = arith.constant 0.000000e+00 : f32
    %26 = vector.broadcast %cst_24 : f32 to vector<32x32xf32>
    %27 = vector.extract_strided_slice %18 {offsets = [0, 0], sizes = [32, 1], strides = [1, 1]} : vector<32x8xf32> to vector<32x1xf32>
    %28 = vector.extract_strided_slice %20 {offsets = [0, 0], sizes = [1, 32], strides = [1, 1]} : vector<8x32xf32> to vector<1x32xf32>
    %29 = vector.broadcast %27 : vector<32x1xf32> to vector<32x32xf32>
    %30 = vector.broadcast %28 : vector<1x32xf32> to vector<32x32xf32>
    %31 = arith.addf %29, %30 : vector<32x32xf32>
    %32 = math.tanh %31 : vector<32x32xf32>
    %33 = arith.addf %32, %25 : vector<32x32xf32>
    %cst_25 = arith.constant dense<0xFF800000> : vector<32xf32>
    %34 = vector.multi_reduction <maximumf>, %33, %cst_25 [1] : vector<32x32xf32> to vector<32xf32>
    %35 = vector.shape_cast %34 : vector<32xf32> to vector<32x1xf32>
    %36 = vector.broadcast %35 : vector<32x1xf32> to vector<32x32xf32>
    %37 = arith.subf %33, %36 : vector<32x32xf32>
    %38 = math.exp %37 : vector<32x32xf32>
    %cst_26 = arith.constant dense<0.000000e+00> : vector<32xf32>
    %39 = vector.multi_reduction <add>, %38, %cst_26 [1] : vector<32x32xf32> to vector<32xf32>
    %40 = vector.shape_cast %39 : vector<32xf32> to vector<32x1xf32>
    %41 = tpu.reciprocal %40 {approx = true} : vector<32x1xf32> -> vector<32x1xf32>
    %42 = vector.broadcast %41 : vector<32x1xf32> to vector<32x32xf32>
    %43 = arith.mulf %38, %42 : vector<32x32xf32>
    %44 = arith.truncf %43 : vector<32x32xf32> to vector<32x32xbf16>
    %45 = vector.extract_strided_slice %24 {offsets = [0, 0], sizes = [32, 32], strides = [1, 1]} : vector<32x256xbf16> to vector<32x32xbf16>
    %cst_27 = arith.constant dense<0.000000e+00> : vector<32x32xf32>
    %46 = tpu.matmul %44, %45, %cst_27 {dimension_numbers = #tpu.dot_dimension_numbers<[1], [0], [0], [1], [0, 0, 1, 1], [], []>} : vector<32x32xbf16>, vector<32x32xbf16>, vector<32x32xf32> -> vector<32x32xf32>
    %47 = arith.addf %26, %46 : vector<32x32xf32>
    %48 = vector.extract_strided_slice %18 {offsets = [0, 1], sizes = [32, 1], strides = [1, 1]} : vector<32x8xf32> to vector<32x1xf32>
    %49 = vector.extract_strided_slice %20 {offsets = [1, 0], sizes = [1, 32], strides = [1, 1]} : vector<8x32xf32> to vector<1x32xf32>
    %50 = vector.broadcast %48 : vector<32x1xf32> to vector<32x32xf32>
    %51 = vector.broadcast %49 : vector<1x32xf32> to vector<32x32xf32>
    %52 = arith.addf %50, %51 : vector<32x32xf32>
    %53 = math.tanh %52 : vector<32x32xf32>
    %54 = arith.addf %53, %25 : vector<32x32xf32>
    %cst_28 = arith.constant dense<0xFF800000> : vector<32xf32>
    %55 = vector.multi_reduction <maximumf>, %54, %cst_28 [1] : vector<32x32xf32> to vector<32xf32>
    %56 = vector.shape_cast %55 : vector<32xf32> to vector<32x1xf32>
    %57 = vector.broadcast %56 : vector<32x1xf32> to vector<32x32xf32>
    %58 = arith.subf %54, %57 : vector<32x32xf32>
    %59 = math.exp %58 : vector<32x32xf32>
    %cst_29 = arith.constant dense<0.000000e+00> : vector<32xf32>
    %60 = vector.multi_reduction <add>, %59, %cst_29 [1] : vector<32x32xf32> to vector<32xf32>
    %61 = vector.shape_cast %60 : vector<32xf32> to vector<32x1xf32>
    %62 = tpu.reciprocal %61 {approx = true} : vector<32x1xf32> -> vector<32x1xf32>
    %63 = vector.broadcast %62 : vector<32x1xf32> to vector<32x32xf32>
    %64 = arith.mulf %59, %63 : vector<32x32xf32>
    %65 = arith.truncf %64 : vector<32x32xf32> to vector<32x32xbf16>
    %66 = vector.extract_strided_slice %24 {offsets = [0, 32], sizes = [32, 32], strides = [1, 1]} : vector<32x256xbf16> to vector<32x32xbf16>
    %cst_30 = arith.constant dense<0.000000e+00> : vector<32x32xf32>
    %67 = tpu.matmul %65, %66, %cst_30 {dimension_numbers = #tpu.dot_dimension_numbers<[1], [0], [0], [1], [0, 0, 1, 1], [], []>} : vector<32x32xbf16>, vector<32x32xbf16>, vector<32x32xf32> -> vector<32x32xf32>
    %68 = arith.addf %47, %67 : vector<32x32xf32>
    %69 = vector.extract_strided_slice %18 {offsets = [0, 2], sizes = [32, 1], strides = [1, 1]} : vector<32x8xf32> to vector<32x1xf32>
    %70 = vector.extract_strided_slice %20 {offsets = [2, 0], sizes = [1, 32], strides = [1, 1]} : vector<8x32xf32> to vector<1x32xf32>
    %71 = vector.broadcast %69 : vector<32x1xf32> to vector<32x32xf32>
    %72 = vector.broadcast %70 : vector<1x32xf32> to vector<32x32xf32>
    %73 = arith.addf %71, %72 : vector<32x32xf32>
    %74 = math.tanh %73 : vector<32x32xf32>
    %75 = arith.addf %74, %25 : vector<32x32xf32>
    %cst_31 = arith.constant dense<0xFF800000> : vector<32xf32>
    %76 = vector.multi_reduction <maximumf>, %75, %cst_31 [1] : vector<32x32xf32> to vector<32xf32>
    %77 = vector.shape_cast %76 : vector<32xf32> to vector<32x1xf32>
    %78 = vector.broadcast %77 : vector<32x1xf32> to vector<32x32xf32>
    %79 = arith.subf %75, %78 : vector<32x32xf32>
    %80 = math.exp %79 : vector<32x32xf32>
    %cst_32 = arith.constant dense<0.000000e+00> : vector<32xf32>
    %81 = vector.multi_reduction <add>, %80, %cst_32 [1] : vector<32x32xf32> to vector<32xf32>
    %82 = vector.shape_cast %81 : vector<32xf32> to vector<32x1xf32>
    %83 = tpu.reciprocal %82 {approx = true} : vector<32x1xf32> -> vector<32x1xf32>
    %84 = vector.broadcast %83 : vector<32x1xf32> to vector<32x32xf32>
    %85 = arith.mulf %80, %84 : vector<32x32xf32>
    %86 = arith.truncf %85 : vector<32x32xf32> to vector<32x32xbf16>
    %87 = vector.extract_strided_slice %24 {offsets = [0, 64], sizes = [32, 32], strides = [1, 1]} : vector<32x256xbf16> to vector<32x32xbf16>
    %cst_33 = arith.constant dense<0.000000e+00> : vector<32x32xf32>
    %88 = tpu.matmul %86, %87, %cst_33 {dimension_numbers = #tpu.dot_dimension_numbers<[1], [0], [0], [1], [0, 0, 1, 1], [], []>} : vector<32x32xbf16>, vector<32x32xbf16>, vector<32x32xf32> -> vector<32x32xf32>
    %89 = arith.addf %68, %88 : vector<32x32xf32>
    %90 = vector.extract_strided_slice %18 {offsets = [0, 3], sizes = [32, 1], strides = [1, 1]} : vector<32x8xf32> to vector<32x1xf32>
    %91 = vector.extract_strided_slice %20 {offsets = [3, 0], sizes = [1, 32], strides = [1, 1]} : vector<8x32xf32> to vector<1x32xf32>
    %92 = vector.broadcast %90 : vector<32x1xf32> to vector<32x32xf32>
    %93 = vector.broadcast %91 : vector<1x32xf32> to vector<32x32xf32>
    %94 = arith.addf %92, %93 : vector<32x32xf32>
    %95 = math.tanh %94 : vector<32x32xf32>
    %96 = arith.addf %95, %25 : vector<32x32xf32>
    %cst_34 = arith.constant dense<0xFF800000> : vector<32xf32>
    %97 = vector.multi_reduction <maximumf>, %96, %cst_34 [1] : vector<32x32xf32> to vector<32xf32>
    %98 = vector.shape_cast %97 : vector<32xf32> to vector<32x1xf32>
    %99 = vector.broadcast %98 : vector<32x1xf32> to vector<32x32xf32>
    %100 = arith.subf %96, %99 : vector<32x32xf32>
    %101 = math.exp %100 : vector<32x32xf32>
    %cst_35 = arith.constant dense<0.000000e+00> : vector<32xf32>
    %102 = vector.multi_reduction <add>, %101, %cst_35 [1] : vector<32x32xf32> to vector<32xf32>
    %103 = vector.shape_cast %102 : vector<32xf32> to vector<32x1xf32>
    %104 = tpu.reciprocal %103 {approx = true} : vector<32x1xf32> -> vector<32x1xf32>
    %105 = vector.broadcast %104 : vector<32x1xf32> to vector<32x32xf32>
    %106 = arith.mulf %101, %105 : vector<32x32xf32>
    %107 = arith.truncf %106 : vector<32x32xf32> to vector<32x32xbf16>
    %108 = vector.extract_strided_slice %24 {offsets = [0, 96], sizes = [32, 32], strides = [1, 1]} : vector<32x256xbf16> to vector<32x32xbf16>
    %cst_36 = arith.constant dense<0.000000e+00> : vector<32x32xf32>
    %109 = tpu.matmul %107, %108, %cst_36 {dimension_numbers = #tpu.dot_dimension_numbers<[1], [0], [0], [1], [0, 0, 1, 1], [], []>} : vector<32x32xbf16>, vector<32x32xbf16>, vector<32x32xf32> -> vector<32x32xf32>
    %110 = arith.addf %89, %109 : vector<32x32xf32>
    %111 = vector.extract_strided_slice %18 {offsets = [0, 4], sizes = [32, 1], strides = [1, 1]} : vector<32x8xf32> to vector<32x1xf32>
    %112 = vector.extract_strided_slice %20 {offsets = [4, 0], sizes = [1, 32], strides = [1, 1]} : vector<8x32xf32> to vector<1x32xf32>
    %113 = vector.broadcast %111 : vector<32x1xf32> to vector<32x32xf32>
    %114 = vector.broadcast %112 : vector<1x32xf32> to vector<32x32xf32>
    %115 = arith.addf %113, %114 : vector<32x32xf32>
    %116 = math.tanh %115 : vector<32x32xf32>
    %117 = arith.addf %116, %25 : vector<32x32xf32>
    %cst_37 = arith.constant dense<0xFF800000> : vector<32xf32>
    %118 = vector.multi_reduction <maximumf>, %117, %cst_37 [1] : vector<32x32xf32> to vector<32xf32>
    %119 = vector.shape_cast %118 : vector<32xf32> to vector<32x1xf32>
    %120 = vector.broadcast %119 : vector<32x1xf32> to vector<32x32xf32>
    %121 = arith.subf %117, %120 : vector<32x32xf32>
    %122 = math.exp %121 : vector<32x32xf32>
    %cst_38 = arith.constant dense<0.000000e+00> : vector<32xf32>
    %123 = vector.multi_reduction <add>, %122, %cst_38 [1] : vector<32x32xf32> to vector<32xf32>
    %124 = vector.shape_cast %123 : vector<32xf32> to vector<32x1xf32>
    %125 = tpu.reciprocal %124 {approx = true} : vector<32x1xf32> -> vector<32x1xf32>
    %126 = vector.broadcast %125 : vector<32x1xf32> to vector<32x32xf32>
    %127 = arith.mulf %122, %126 : vector<32x32xf32>
    %128 = arith.truncf %127 : vector<32x32xf32> to vector<32x32xbf16>
    %129 = vector.extract_strided_slice %24 {offsets = [0, 128], sizes = [32, 32], strides = [1, 1]} : vector<32x256xbf16> to vector<32x32xbf16>
    %cst_39 = arith.constant dense<0.000000e+00> : vector<32x32xf32>
    %130 = tpu.matmul %128, %129, %cst_39 {dimension_numbers = #tpu.dot_dimension_numbers<[1], [0], [0], [1], [0, 0, 1, 1], [], []>} : vector<32x32xbf16>, vector<32x32xbf16>, vector<32x32xf32> -> vector<32x32xf32>
    %131 = arith.addf %110, %130 : vector<32x32xf32>
    %132 = vector.extract_strided_slice %18 {offsets = [0, 5], sizes = [32, 1], strides = [1, 1]} : vector<32x8xf32> to vector<32x1xf32>
    %133 = vector.extract_strided_slice %20 {offsets = [5, 0], sizes = [1, 32], strides = [1, 1]} : vector<8x32xf32> to vector<1x32xf32>
    %134 = vector.broadcast %132 : vector<32x1xf32> to vector<32x32xf32>
    %135 = vector.broadcast %133 : vector<1x32xf32> to vector<32x32xf32>
    %136 = arith.addf %134, %135 : vector<32x32xf32>
    %137 = math.tanh %136 : vector<32x32xf32>
    %138 = arith.addf %137, %25 : vector<32x32xf32>
    %cst_40 = arith.constant dense<0xFF800000> : vector<32xf32>
    %139 = vector.multi_reduction <maximumf>, %138, %cst_40 [1] : vector<32x32xf32> to vector<32xf32>
    %140 = vector.shape_cast %139 : vector<32xf32> to vector<32x1xf32>
    %141 = vector.broadcast %140 : vector<32x1xf32> to vector<32x32xf32>
    %142 = arith.subf %138, %141 : vector<32x32xf32>
    %143 = math.exp %142 : vector<32x32xf32>
    %cst_41 = arith.constant dense<0.000000e+00> : vector<32xf32>
    %144 = vector.multi_reduction <add>, %143, %cst_41 [1] : vector<32x32xf32> to vector<32xf32>
    %145 = vector.shape_cast %144 : vector<32xf32> to vector<32x1xf32>
    %146 = tpu.reciprocal %145 {approx = true} : vector<32x1xf32> -> vector<32x1xf32>
    %147 = vector.broadcast %146 : vector<32x1xf32> to vector<32x32xf32>
    %148 = arith.mulf %143, %147 : vector<32x32xf32>
    %149 = arith.truncf %148 : vector<32x32xf32> to vector<32x32xbf16>
    %150 = vector.extract_strided_slice %24 {offsets = [0, 160], sizes = [32, 32], strides = [1, 1]} : vector<32x256xbf16> to vector<32x32xbf16>
    %cst_42 = arith.constant dense<0.000000e+00> : vector<32x32xf32>
    %151 = tpu.matmul %149, %150, %cst_42 {dimension_numbers = #tpu.dot_dimension_numbers<[1], [0], [0], [1], [0, 0, 1, 1], [], []>} : vector<32x32xbf16>, vector<32x32xbf16>, vector<32x32xf32> -> vector<32x32xf32>
    %152 = arith.addf %131, %151 : vector<32x32xf32>
    %153 = vector.extract_strided_slice %18 {offsets = [0, 6], sizes = [32, 1], strides = [1, 1]} : vector<32x8xf32> to vector<32x1xf32>
    %154 = vector.extract_strided_slice %20 {offsets = [6, 0], sizes = [1, 32], strides = [1, 1]} : vector<8x32xf32> to vector<1x32xf32>
    %155 = vector.broadcast %153 : vector<32x1xf32> to vector<32x32xf32>
    %156 = vector.broadcast %154 : vector<1x32xf32> to vector<32x32xf32>
    %157 = arith.addf %155, %156 : vector<32x32xf32>
    %158 = math.tanh %157 : vector<32x32xf32>
    %159 = arith.addf %158, %25 : vector<32x32xf32>
    %cst_43 = arith.constant dense<0xFF800000> : vector<32xf32>
    %160 = vector.multi_reduction <maximumf>, %159, %cst_43 [1] : vector<32x32xf32> to vector<32xf32>
    %161 = vector.shape_cast %160 : vector<32xf32> to vector<32x1xf32>
    %162 = vector.broadcast %161 : vector<32x1xf32> to vector<32x32xf32>
    %163 = arith.subf %159, %162 : vector<32x32xf32>
    %164 = math.exp %163 : vector<32x32xf32>
    %cst_44 = arith.constant dense<0.000000e+00> : vector<32xf32>
    %165 = vector.multi_reduction <add>, %164, %cst_44 [1] : vector<32x32xf32> to vector<32xf32>
    %166 = vector.shape_cast %165 : vector<32xf32> to vector<32x1xf32>
    %167 = tpu.reciprocal %166 {approx = true} : vector<32x1xf32> -> vector<32x1xf32>
    %168 = vector.broadcast %167 : vector<32x1xf32> to vector<32x32xf32>
    %169 = arith.mulf %164, %168 : vector<32x32xf32>
    %170 = arith.truncf %169 : vector<32x32xf32> to vector<32x32xbf16>
    %171 = vector.extract_strided_slice %24 {offsets = [0, 192], sizes = [32, 32], strides = [1, 1]} : vector<32x256xbf16> to vector<32x32xbf16>
    %cst_45 = arith.constant dense<0.000000e+00> : vector<32x32xf32>
    %172 = tpu.matmul %170, %171, %cst_45 {dimension_numbers = #tpu.dot_dimension_numbers<[1], [0], [0], [1], [0, 0, 1, 1], [], []>} : vector<32x32xbf16>, vector<32x32xbf16>, vector<32x32xf32> -> vector<32x32xf32>
    %173 = arith.addf %152, %172 : vector<32x32xf32>
    %174 = vector.extract_strided_slice %18 {offsets = [0, 7], sizes = [32, 1], strides = [1, 1]} : vector<32x8xf32> to vector<32x1xf32>
    %175 = vector.extract_strided_slice %20 {offsets = [7, 0], sizes = [1, 32], strides = [1, 1]} : vector<8x32xf32> to vector<1x32xf32>
    %176 = vector.broadcast %174 : vector<32x1xf32> to vector<32x32xf32>
    %177 = vector.broadcast %175 : vector<1x32xf32> to vector<32x32xf32>
    %178 = arith.addf %176, %177 : vector<32x32xf32>
    %179 = math.tanh %178 : vector<32x32xf32>
    %180 = arith.addf %179, %25 : vector<32x32xf32>
    %cst_46 = arith.constant dense<0xFF800000> : vector<32xf32>
    %181 = vector.multi_reduction <maximumf>, %180, %cst_46 [1] : vector<32x32xf32> to vector<32xf32>
    %182 = vector.shape_cast %181 : vector<32xf32> to vector<32x1xf32>
    %183 = vector.broadcast %182 : vector<32x1xf32> to vector<32x32xf32>
    %184 = arith.subf %180, %183 : vector<32x32xf32>
    %185 = math.exp %184 : vector<32x32xf32>
    %cst_47 = arith.constant dense<0.000000e+00> : vector<32xf32>
    %186 = vector.multi_reduction <add>, %185, %cst_47 [1] : vector<32x32xf32> to vector<32xf32>
    %187 = vector.shape_cast %186 : vector<32xf32> to vector<32x1xf32>
    %188 = tpu.reciprocal %187 {approx = true} : vector<32x1xf32> -> vector<32x1xf32>
    %189 = vector.broadcast %188 : vector<32x1xf32> to vector<32x32xf32>
    %190 = arith.mulf %185, %189 : vector<32x32xf32>
    %191 = arith.truncf %190 : vector<32x32xf32> to vector<32x32xbf16>
    %192 = vector.extract_strided_slice %24 {offsets = [0, 224], sizes = [32, 32], strides = [1, 1]} : vector<32x256xbf16> to vector<32x32xbf16>
    %cst_48 = arith.constant dense<0.000000e+00> : vector<32x32xf32>
    %193 = tpu.matmul %191, %192, %cst_48 {dimension_numbers = #tpu.dot_dimension_numbers<[1], [0], [0], [1], [0, 0, 1, 1], [], []>} : vector<32x32xbf16>, vector<32x32xbf16>, vector<32x32xf32> -> vector<32x32xf32>
    %194 = arith.addf %173, %193 : vector<32x32xf32>
    %c0_49 = arith.constant 0 : index
    %c0_50 = arith.constant 0 : index
    %195 = vector.load %arg12[%c0_49, %c0_50] : memref<1x32xf32, #tpu.memory_space<vmem>>, vector<1x32xf32>
    %196 = vector.broadcast %195 : vector<1x32xf32> to vector<32x32xf32>
    %197 = arith.addf %194, %196 : vector<32x32xf32>
    %c0_51 = arith.constant 0 : index
    %c0_52 = arith.constant 0 : index
    %c0_53 = arith.constant 0 : index
    %198 = vector.load %arg2[%c0_51, %c0_52, %c0_53] : memref<1x2x32xf32, #tpu.memory_space<vmem>>, vector<1x2x32xf32>
    %199 = vector.shape_cast %198 : vector<1x2x32xf32> to vector<2x32xf32>
    %cst_54 = arith.constant dense<0.000000e+00> : vector<2x32xf32>
    %200 = tpu.matmul %199, %197, %cst_54 {dimension_numbers = #tpu.dot_dimension_numbers<[1], [0], [0], [1], [0, 0, 1, 1], [], []>} : vector<2x32xf32>, vector<32x32xf32>, vector<2x32xf32> -> vector<2x32xf32>
    %c0_55 = arith.constant 0 : index
    %c0_56 = arith.constant 0 : index
    %201 = vector.load %arg13[%c0_55, %c0_56] : memref<32x128xf32, #tpu.memory_space<vmem>>, vector<32x128xf32>
    %cst_57 = arith.constant dense<0.000000e+00> : vector<2x128xf32>
    %202 = tpu.matmul %200, %201, %cst_57 {dimension_numbers = #tpu.dot_dimension_numbers<[1], [0], [0], [1], [0, 0, 1, 1], [], []>} : vector<2x32xf32>, vector<32x128xf32>, vector<2x128xf32> -> vector<2x128xf32>
    %c0_58 = arith.constant 0 : index
    %c0_59 = arith.constant 0 : index
    %203 = vector.load %arg14[%c0_58, %c0_59] : memref<1x128xf32, #tpu.memory_space<vmem>>, vector<1x128xf32>
    %204 = vector.broadcast %203 : vector<1x128xf32> to vector<2x128xf32>
    %205 = arith.addf %202, %204 : vector<2x128xf32>
    %206 = vector.shape_cast %205 : vector<2x128xf32> to vector<1x2x128xf32>
    %c0_60 = arith.constant 0 : index
    %c0_61 = arith.constant 0 : index
    %c0_62 = arith.constant 0 : index
    %207 = vector.load %arg15[%c0_60, %c0_61, %c0_62] : memref<1x2x128xf32, #tpu.memory_space<vmem>>, vector<1x2x128xf32>
    tpu.vector_store %arg15[%c0_60, %c0_61, %c0_62], %206 {strides = array<i32>} : memref<1x2x128xf32, #tpu.memory_space<vmem>>, vector<1x2x128xf32>,
    return
  }
  func.func @transform_0(%arg0: i32) -> (i32, i32) {
    %c0_i32 = arith.constant 0 : i32
    %c0_i32_0 = arith.constant 0 : i32
    return %arg0, %c0_i32 : i32, i32
  }
  func.func @transform_1(%arg0: i32) -> (i32, i32, i32) {
    %c0_i32 = arith.constant 0 : i32
    %c0_i32_0 = arith.constant 0 : i32
    %c0_i32_1 = arith.constant 0 : i32
    return %arg0, %c0_i32, %c0_i32_0 : i32, i32, i32
  }
  func.func @transform_2(%arg0: i32) -> (i32, i32) {
    %c0_i32 = arith.constant 0 : i32
    %c0_i32_0 = arith.constant 0 : i32
    %c0_i32_1 = arith.constant 0 : i32
    return %c0_i32, %c0_i32_0 : i32, i32
  }
  func.func @transform_3(%arg0: i32) -> (i32, i32) {
    %c0_i32 = arith.constant 0 : i32
    %c0_i32_0 = arith.constant 0 : i32
    %c0_i32_1 = arith.constant 0 : i32
    return %c0_i32, %c0_i32_0 : i32, i32
  }
  func.func @transform_4(%arg0: i32) -> (i32, i32) {
    %c0_i32 = arith.constant 0 : i32
    %c0_i32_0 = arith.constant 0 : i32
    %c0_i32_1 = arith.constant 0 : i32
    return %c0_i32, %c0_i32_0 : i32, i32
  }
  func.func @transform_5(%arg0: i32) -> (i32, i32) {
    %c0_i32 = arith.constant 0 : i32
    %c0_i32_0 = arith.constant 0 : i32
    %c0_i32_1 = arith.constant 0 : i32
    return %c0_i32, %c0_i32_0 : i32, i32
  }
  func.func @transform_6(%arg0: i32) -> (i32, i32) {
    %c0_i32 = arith.constant 0 : i32
    %c0_i32_0 = arith.constant 0 : i32
    %c0_i32_1 = arith.constant 0 : i32
    return %c0_i32, %c0_i32_0 : i32, i32
  }
  func.func @transform_7(%arg0: i32) -> (i32, i32) {
    %c0_i32 = arith.constant 0 : i32
    %c0_i32_0 = arith.constant 0 : i32
    %c0_i32_1 = arith.constant 0 : i32
    return %c0_i32, %c0_i32_0 : i32, i32
  }
  func.func @transform_8(%arg0: i32) -> (i32, i32) {
    %c0_i32 = arith.constant 0 : i32
    %c0_i32_0 = arith.constant 0 : i32
    %c0_i32_1 = arith.constant 0 : i32
    return %c0_i32, %c0_i32_0 : i32, i32
  }
  func.func @transform_9(%arg0: i32) -> (i32, i32) {
    %c0_i32 = arith.constant 0 : i32
    %c0_i32_0 = arith.constant 0 : i32
    %c0_i32_1 = arith.constant 0 : i32
    return %c0_i32, %c0_i32_0 : i32, i32
  }
  func.func @transform_10(%arg0: i32) -> (i32, i32) {
    %c0_i32 = arith.constant 0 : i32
    %c0_i32_0 = arith.constant 0 : i32
    %c0_i32_1 = arith.constant 0 : i32
    return %c0_i32, %c0_i32_0 : i32, i32
  }
  func.func @transform_11(%arg0: i32) -> (i32, i32) {
    %c0_i32 = arith.constant 0 : i32
    %c0_i32_0 = arith.constant 0 : i32
    %c0_i32_1 = arith.constant 0 : i32
    return %c0_i32, %c0_i32_0 : i32, i32
  }
  func.func @transform_12(%arg0: i32) -> (i32, i32) {
    %c0_i32 = arith.constant 0 : i32
    %c0_i32_0 = arith.constant 0 : i32
    %c0_i32_1 = arith.constant 0 : i32
    return %c0_i32, %c0_i32_0 : i32, i32
  }
  func.func @transform_13(%arg0: i32) -> (i32, i32) {
    %c0_i32 = arith.constant 0 : i32
    %c0_i32_0 = arith.constant 0 : i32
    %c0_i32_1 = arith.constant 0 : i32
    return %c0_i32, %c0_i32_0 : i32, i32
  }
  func.func @transform_14(%arg0: i32) -> (i32, i32, i32) {
    %c0_i32 = arith.constant 0 : i32
    %c0_i32_0 = arith.constant 0 : i32
    %c0_i32_1 = arith.constant 0 : i32
    return %arg0, %c0_i32, %c0_i32_0 : i32, i32, i32
  }
}

</mosaic_0001>

<bundles_post_ra>
// kernel: tpu_custom_call.1
= control target key start
LH: loop header
LB: loop body
LE: loop exit
PB: predicated region body
PF: predicated region fallthrough
CT: control target
= control target key end

     0   :  { %19 = vsyncpa [#allocation3], 0  ;;  %s2661_s0 = inlined_call_operand.vmem [shape: bf16[32,128], index: 0, kind: input, shape index: {}]   ;;  %s2662_s1 = inlined_call_operand.vmem [shape: f32[1,2,32], index: 1, kind: input, shape index: {}]   ;;  %s2663_s2 = inlined_call_operand.vmem [shape: f32[32,32], index: 2, kind: input, shape index: {}]   ;;  %s2664_s3 = inlined_call_operand.vmem [shape: bf16[128,32], index: 3, kind: input, shape index: {}]   ;;  %s2665_s4 = inlined_call_operand.hbm [shape: f32[1,32], index: 4, kind: input, shape index: {}]   ;;  %s2666_s5 = inlined_call_operand.hbm [shape: bf16[32,32], index: 5, kind: input, shape index: {}]   ;;  %s2667_s6 = inlined_call_operand.hbm [shape: f32[1,32], index: 6, kind: input, shape index: {}]   ;;  %s2668_s7 = inlined_call_operand.vmem [shape: bf16[32,8], index: 7, kind: input, shape index: {}]   ;;  %s2669_s8 = inlined_call_operand.vmem [shape: f32[1,8], index: 8, kind: input, shape index: {}]   ;;  %s2670_s9 = inlined_call_operand.vmem [shape: bf16[8,32], index: 9, kind: input, shape index: {}]   ;;  %s2671_s10 = inlined_call_operand.vmem [shape: bf16[32,256], index: 10, kind: input, shape index: {}]   ;;  %s2672_s11 = inlined_call_operand.vmem [shape: f32[1,32], index: 11, kind: input, shape index: {}]   ;;  %s2673_s12 = inlined_call_operand.hbm [shape: f32[32,128], index: 12, kind: input, shape index: {}]   ;;  %s2674_s13 = inlined_call_operand.vmem [shape: f32[1,128], index: 13, kind: input, shape index: {}]   ;;  %s2675_s14 = inlined_call_operand.hbm [shape: f32[1,2,128], index: 14, kind: output, shape index: {}]  }
   0x1   :  { %20 = vsyncpa [#allocation6], 0 }
   0x2   :  { %21 = vsyncpa [#allocation9], 0  ;;  %s46_s15 = sshll.u32 %s2666_s5, 4  ;;  %s47_s15 = int_to_ptr.hbm [resolvable:$true] %s46_s15 }
   0x3   :  { %22 = vsyncpa [#allocation4], 0  ;;  %s1857_s16 = smov [#allocation5]   ;;  %s36_s20 = sshll.u32 %s2665_s4, 4  ;;  %s37_s20 = int_to_ptr.hbm [resolvable:$true] %s36_s20 }
   0x4   :  { %s48_s17 = sshll.u32 %s1857_s16, 4  ;;  %s1858_s21 = smov 64   ;;  %s49_s17 = int_to_ptr.vmem [resolvable:$true] %s48_s17 }
   0x5   :  { %s1859_s22 = smov 4   ;;  %s1860_s23 = smov [#allocation2]  }
   0x6   :  { %54 = dma.hbm_to_vmem [thread:$0]  %s47_s15, 256, %s49_s17, [#allocation6], %s1858_s21, %s1858_s21, %s1859_s22  }
   0x7   :  { %s38_s24 = sshll.u32 %s1860_s23, 4  ;;  %s60_s5 = sshll.u32 %s2667_s6, 4  ;;  %s39_s24 = int_to_ptr.vmem [resolvable:$true] %s38_s24  ;;  %s61_s5 = int_to_ptr.hbm [resolvable:$true] %s60_s5 }
   0x8   :  { %41 = dma.hbm_to_vmem [thread:$0]  %s37_s20, 16, %s39_s24, [#allocation3]  }
   0x9   :  { %s80_s29 = sshll.u32 %s2673_s12, 4  ;;  %s1861_s4 = smov [#allocation7]   ;;  %s81_s29 = int_to_ptr.hbm [resolvable:$true] %s80_s29 }
   0xa   :  { %s62_s30 = sshll.u32 %s1861_s4, 4  ;;  %s1862_s15 = smov [#allocation8]   ;;  %s63_s30 = int_to_ptr.vmem [resolvable:$true] %s62_s30 }
   0xb   :  { %65 = dma.hbm_to_vmem [thread:$0]  %s61_s5, 16, %s63_s30, [#allocation6]  }
   0xc   :  { %s82_s16 = sshll.u32 %s1862_s15, 4  ;;  %s1863_s17 = smov 128   ;;  %s83_s16 = int_to_ptr.vmem [resolvable:$true] %s82_s16 }
   0xd   :  { %s1864_s18 = smov 8  }
   0xe   :  { %88 = dma.hbm_to_vmem [thread:$0]  %s81_s29, 512, %s83_s16, [#allocation9], %s1863_s17, %s1863_s17, %s1864_s18  }
   0xf   :  { %1849 = dma.done.wait [#allocation3], 16  }
  0x10   :  { %1850 = vsyncadd [#allocation3], 4294967280 }
  0x11   :  { %1851 = dma.done.wait [#allocation6], 272  }
  0x12   :  { %1852 = vsyncadd [#allocation6], 4294967024 }
  0x13   :  { %1853 = dma.done.wait [#allocation9], 512  }
  0x14   :  { %1854 = vsyncadd [#allocation9], 4294966784  ;;  %v1472_v0 = vld [vmem:[%s2664_s3 + $0x38] sm:$0xff]  ;;  %v1471_v1 = vld [vmem:[%s2664_s3 + $0x30] sm:$0xff]  ;;  %vm237_vm0 = vcmask 261120   ;;  %v1865_v38 = vmov 2  }
  0x15   :  { %192 = vmatpush.bf16.msra.mxu0 %v1472_v0  ;;  %v1470_v2 = vld [vmem:[%s2664_s3 + $0x28] sm:$0xff]  ;;  %v1469_v3 = vld [vmem:[%s2664_s3 + $0x20] sm:$0xff]  ;;  %v1468_v4 = vld [vmem:[%s2664_s3 + $0x18] sm:$0xff]  ;;  %1501 = vset.pattern.permute.xlu1 %v1865_v38  ;;  %v1866_v39 = vmov 1   ;;  %v1867_v43 = vmov 0   ;;  %v1868_v57 = vmov 6  }
  0x16   :  { %v1467_v5 = vld [vmem:[%s2664_s3 + $0x10] sm:$0xff]  ;;  %v1466_v6 = vld [vmem:[%s2664_s3 + $0x8] sm:$0xff]  ;;  %v1465_v7 = vld [vmem:[%s2664_s3] sm:$0xff]  ;;  %1500 = vset.pattern.permute.xlu0 %v1866_v39  ;;  %1502 = vset.pattern.permute.xlu2 %v1867_v43  ;;  %v1869_v58 = vmov 7   ;;  %v1870_v59 = vmov 3   ;;  %s1874_s23 = smov 32  }
  0x17   :  { %v1463_v8 = vld [vmem:[%s2661_s0] sm:$0xff]  ;;  %v1464_v9 = vld [vmem:[%s2661_s0 + $0x8] sm:$0xff]  ;;  %v1435_v32 = vld [vmem:[%s2671_s10 + $0x10] sm:$0xf]  ;;  %s1875_s27 = smov [#allocation10]   ;;  %s1352_s29 = sshll.u32 %s2675_s14, 4  ;;  %s1353_s29 = int_to_ptr.hbm [resolvable:$true] %s1352_s29 }
  0x18   :  { %v1474_v10 = vld [vmem:[#allocation5 + $0x8] sm:$0xff]  ;;  %v1473_v12 = vld [vmem:[#allocation5] sm:$0xff]  ;;  %v1532_v15 = vld [vmem:[#allocation2] ss:$0 sm:$0xff] }
  0x19   :  { %193 = vmatpush.bf16.msra.mxu0 %v1471_v1  ;;  %v1476_v11 = vld [vmem:[%s2668_s7 + $0x8] sm:$0xff]  ;;  %250 = vmatpush.bf16.msra.mxu1 %v1474_v10  ;;  %v1475_v13 = vld [vmem:[%s2668_s7] sm:$0xff]  ;;  %v1480_v33 = vld [vmem:[%s2671_s10 + $0x14] sm:$0xf0]  ;;  %v1871_v1 = vmov 5  }
  0x1a   :  { %289 = vmatpush.bf16.msra.mxu2 %v1476_v11  ;;  %v302_v31 = vld [vmem:[%s2670_s9] sm:$0xf]  ;;  %v1479_v34 = vld [vmem:[%s2671_s10 + $0x14] sm:$0xf]  ;;  %v1436_v35 = vor.u32 %v1480_v33, %v1435_v32  ;;  %v1437_v36 = vld [vmem:[%s2671_s10 + $0x18] sm:$0xf0] }
  0x1b   :  { %v1440_v37 = vor.u32 %v1479_v34, %v1437_v36  ;;  %v1427_v40 = vld [vmem:[%s2671_s10] sm:$0xf]  ;;  %v1478_v41 = vld [vmem:[%s2671_s10 + $0x4] sm:$0xf0]  ;;  %v1477_v42 = vld [vmem:[%s2671_s10 + $0x4] sm:$0xf] }
  0x1c   :  { %v1428_v44 = vor.u32 %v1478_v41, %v1427_v40  ;;  %v1429_v45 = vld [vmem:[%s2671_s10 + $0x8] sm:$0xf0]  ;;  %v1534_v48 = vld [vmem:[%s2669_s8] ss:$0 sm:$0xff]  ;;  %v1533_v49 = vld [vmem:[#allocation7] ss:$0 sm:$0xff] }
  0x1d   :  { %194 = vmatpush.bf16.msra.mxu0 %v1470_v2  ;;  %251 = vmatpush.bf16.msra.mxu1 %v1473_v12  ;;  %v1432_v46 = vor.u32 %v1477_v42, %v1429_v45 }
  0x1e   :  { %290 = vmatpush.bf16.msra.mxu2 %v1475_v13 }
  0x21   :  { %195 = vmatpush.bf16.msra.mxu0 %v1469_v3  ;;  %376 = vmatpush.bf16.msrb.mxu1 %v1440_v37  ;;  %v1872_v3 = vmov 4  }
  0x25   :  { %196 = vmatpush.bf16.msra.mxu0 %v1468_v4  ;;  %377 = vmatpush.bf16.msrb.mxu1 %v1432_v46 }
  0x29   :  { %197 = vmatpush.bf16.msra.mxu0 %v1467_v5 }
  0x2d   :  { %198 = vmatpush.bf16.msra.mxu0 %v1466_v6 }
  0x31   :  { %199 = vmatpush.bf16.msra.mxu0 %v1465_v7 }
  0x34   :  { %200 = vmatmul.bf16.vlgmr.msra.gmra.mxu0 %v1463_v8 }
  0x44   :  { %205 = vmatmul.bf16.gmra.mxu0 %v1464_v9 }
  0xb1   :  { %v201_v14 = vpop.f32.mrf.mxu0 }
  0xb2   :  { %v202_v16 = vadd.f32 %v1532_v15, %v201_v14 }
  0xb4   :  { %v211_v19 = vmax.f32 %v202_v16, 0.0 }
  0xb9   :  { %v203_v17 = vpop.f32.mrf.mxu0 }
  0xba   :  { %v204_v18 = vadd.f32 %v1532_v15, %v203_v17 }
  0xbc   :  { %v212_v20 = vmax.f32 %v204_v18, 0.0 }
  0xbe   :  { %v215_v21 = vpack.c.bf16 %v212_v20, %v211_v19 }
  0xc0   :  { %1412 = vmatmul.msk.bf16.vlgmr.msra.gmra.mxu1 %vm237_vm0, %v215_v21  ;;  %1422 = vmatmul.msk.bf16.vlgmr.msra.gmra.mxu2 %vm237_vm0, %v215_v21  ;;  %v239_v30 = vsel %vm237_vm0, %v215_v21, 0 }
  0xc1   :  { %v206_v22 = vpop.f32.mrf.mxu0 }
  0xc2   :  { %v207_v23 = vadd.f32 %v1532_v15, %v206_v22 }
  0xc4   :  { %v213_v25 = vmax.f32 %v207_v23, 0.0 }
  0xc9   :  { %v208_v24 = vpop.f32.mrf.mxu0 }
  0xca   :  { %v209_v26 = vadd.f32 %v1532_v15, %v208_v24  ;;  %v2082_v24 = vld [vmem:[%s2663_s2] sm:$0xff] }
  0xcc   :  { %v214_v27 = vmax.f32 %v209_v26, 0.0 }
  0xce   :  { %v216_v28 = vpack.c.bf16 %v214_v27, %v213_v25 }
  0xd0   :  { %1413 = vmatmul.msk.bf16.gmra.mxu1 %vm237_vm0, %v216_v28  ;;  %v242_v29 = vsel %vm237_vm0, %v216_v28, 0  ;;  %1423 = vmatmul.msk.bf16.gmra.mxu2 %vm237_vm0, %v216_v28 }
  0xd1   :  { %312 = vmatpush.bf16.xpose.msra.mxu3 %v242_v29 }
  0xd9   :  { %313 = vmatpush.bf16.xpose.msra.mxu3 %v239_v30 }
  0xe0   :  { %1424 = vmatmul.msk.bf16.vlgmr.msra.gmra.mxu3 %vm237_vm0, %v302_v31 }
  0xe1   :  { %357 = vmatpush.bf16.msrb.mxu3 %v1436_v35 }
  0xe5   :  { %358 = vmatpush.bf16.msrb.mxu3 %v1428_v44 }
 0x13d   :  { %v253_v47 = vpop.f32.mrf.mxu1 }
 0x13e   :  { %v254_v53 = vadd.f32 %v1533_v49, %v253_v47 }
 0x143   :  { %v292_v50 = vpop.f32.mrf.mxu2 }
 0x144   :  { %v293_v51 = vadd.f32 %v1534_v48, %v292_v50 }
 0x145   :  { %v255_v52 = vpop.f32.mrf.mxu1 }
 0x146   :  { %v256_v54 = vadd.f32 %v1533_v49, %v255_v52  ;;  %399 = vperm.xlu2 %1502, %v293_v51   ;;  %620 = vperm.xlu1 %1501, %v293_v51   ;;  %v2124_v52 = vld [vmem:[%s2663_s2 + $0x8] sm:$0xff] }
 0x147   :  { %477 = vperm.xlu0 %1500, %v293_v51  }
 0x148   :  { %v319_v55 = vpack.c.bf16 %v256_v54, %v254_v53 }
 0x14a   :  { %1441 = vmatmul.msk.bf16.vlgmr.msrb.gmra.mxu3 %vm237_vm0, %v319_v55  ;;  %1443 = vmatmul.msk.bf16.vlgmr.msrb.gmra.mxu1 %vm237_vm0, %v319_v55 }
 0x14b   :  { %v294_v60 = vpop.f32.mrf.mxu2 }
 0x14c   :  { %v295_v0 = vadd.f32 %v1534_v48, %v294_v60 }
 0x14d   :  { %v258_v56 = vpop.f32.mrf.mxu1 }
 0x14e   :  { %1505 = vset.pattern.permute.xlu2 %v1868_v57  ;;  %1507 = vset.pattern.permute.xlu1 %v1869_v58  ;;  %v259_v61 = vadd.f32 %v1533_v49, %v258_v56 }
 0x14f   :  { %1503 = vset.pattern.permute.xlu0 %v1870_v59  ;;  %1062 = vperm.xlu2 %1505, %v293_v51  }
 0x150   :  { %1172 = vperm.xlu1 %1507, %v293_v51   ;;  %730 = vperm.xlu0 %1503, %v293_v51  }
 0x153   :  { %v297_v4 = vpop.f32.mrf.mxu2 }
 0x154   :  { %v298_v6 = vadd.f32 %v1534_v48, %v297_v4 }
 0x155   :  { %v260_v62 = vpop.f32.mrf.mxu1 }
 0x156   :  { %v261_v63 = vadd.f32 %v1533_v49, %v260_v62 }
 0x157   :  { %1506 = vset.pattern.permute.xlu2 %v1871_v1 }
 0x158   :  { %v320_v2 = vpack.c.bf16 %v261_v63, %v259_v61  ;;  %1509 = vset.pattern.permute.xlu1 %v1865_v38  ;;  %1504 = vset.pattern.permute.xlu0 %v1872_v3 }
 0x159   :  { %952 = vperm.xlu2 %1506, %v293_v51   ;;  %624 = vperm.xlu1 %1509, %v295_v0  }
 0x15a   :  { %840 = vperm.xlu0 %1504, %v293_v51   ;;  %1442 = vmatmul.msk.bf16.gmra.mxu3 %vm237_vm0, %v320_v2 }
 0x15b   :  { %1444 = vmatmul.msk.bf16.gmra.mxu1 %vm237_vm0, %v320_v2  ;;  %v299_v5 = vpop.f32.mrf.mxu2 }
 0x15c   :  { %v300_v7 = vadd.f32 %v1534_v48, %v299_v5 }
 0x161   :  { %1510 = vset.pattern.permute.xlu2 %v1867_v43  ;;  %1511 = vset.pattern.permute.xlu1 %v1870_v59 }
 0x162   :  { %1508 = vset.pattern.permute.xlu0 %v1866_v39  ;;  %404 = vperm.xlu2 %1510, %v295_v0  }
 0x163   :  { %734 = vperm.xlu1 %1511, %v295_v0   ;;  %481 = vperm.xlu0 %1508, %v295_v0   ;;  %v2054_v8 = vpop.f32.mrf.mxu3 }
 0x164   :  { %v2067_v13 = vperm.slane %v2054_v8, 1  ;;  %v2070_v14 = vperm.slane %v2054_v8, 5  ;;  %v2077_v20 = vperm.slane %v2054_v8, 2  ;;  %v2089_v27 = vperm.slane %v2054_v8, 0 }
 0x165   :  { %v2097_v33 = vperm.slane %v2054_v8, 4  ;;  %v2103_v35 = vperm.slane %v2054_v8, 7  ;;  %v2111_v44 = vperm.slane %v2054_v8, 3 }
 0x16a   :  { %1515 = vset.pattern.permute.xlu2 %v1869_v58 }
 0x16b   :  { %1512 = vset.pattern.permute.xlu1 %v1872_v3  ;;  %1514 = vset.pattern.permute.xlu0 %v1871_v1  ;;  %v317_v9 = vpop.f32.mrf.mxu3 }
 0x16c   :  { %1176 = vperm.xlu2 %1515, %v295_v0   ;;  %844 = vperm.xlu1 %1512, %v295_v0  }
 0x16d   :  { %956 = vperm.xlu0 %1514, %v295_v0  }
 0x174   :  { %1516 = vset.pattern.permute.xlu2 %v1866_v39  ;;  %1513 = vset.pattern.permute.xlu1 %v1868_v57 }
 0x175   :  { %1525 = vset.pattern.permute.xlu0 %v1865_v38  ;;  %485 = vperm.xlu2 %1516, %v298_v6  }
 0x176   :  { %1066 = vperm.xlu1 %1513, %v295_v0   ;;  %632 = vperm.xlu0 %1525, %v300_v7  }
 0x17d   :  { %1517 = vset.pattern.permute.xlu2 %v1865_v38 }
 0x17e   :  { %1518 = vset.pattern.permute.xlu1 %v1867_v43  ;;  %1530 = vset.pattern.permute.xlu0 %v1871_v1 }
 0x17f   :  { %628 = vperm.xlu2 %1517, %v298_v6   ;;  %409 = vperm.xlu1 %1518, %v298_v6  }
 0x180   :  { %964 = vperm.xlu0 %1530, %v300_v7  }
 0x187   :  { %1521 = vset.pattern.permute.xlu2 %v1868_v57  ;;  %1519 = vset.pattern.permute.xlu1 %v1870_v59 }
 0x188   :  { %1531 = vset.pattern.permute.xlu0 %v1869_v58  ;;  %1070 = vperm.xlu2 %1521, %v298_v6  }
 0x189   :  { %738 = vperm.xlu1 %1519, %v298_v6   ;;  %1184 = vperm.xlu0 %1531, %v300_v7  }
 0x190   :  { %1526 = vset.pattern.permute.xlu2 %v1867_v43 }
 0x191   :  { %1520 = vset.pattern.permute.xlu1 %v1872_v3  ;;  %414 = vperm.xlu2 %1526, %v300_v7  }
 0x192   :  { %848 = vperm.xlu1 %1520, %v298_v6  }
 0x199   :  { %1527 = vset.pattern.permute.xlu2 %v1870_v59 }
 0x19a   :  { %1522 = vset.pattern.permute.xlu1 %v1871_v1  ;;  %742 = vperm.xlu2 %1527, %v300_v7  }
 0x19b   :  { %960 = vperm.xlu1 %1522, %v298_v6  }
 0x1a0   :  { %v400_v10 = vpop.permute.xlu2 %399 }
 0x1a1   :  { %v418_v32 = vadd.f32 %v2089_v27, %v400_v10 }
 0x1a2   :  { %1528 = vset.pattern.permute.xlu2 %v1872_v3 }
 0x1a3   :  { %1523 = vset.pattern.permute.xlu1 %v1869_v58  ;;  %852 = vperm.xlu2 %1528, %v300_v7   ;;  %v2132_v58 = vperm.slane %v2054_v8, 6 }
 0x1a4   :  { %1180 = vperm.xlu1 %1523, %v298_v6  }
 0x1a9   :  { %v2062_v11 = vpop.permute.xlu2 %1062 }
 0x1ab   :  { %1529 = vset.pattern.permute.xlu2 %v1868_v57 }
 0x1ac   :  { %1524 = vset.pattern.permute.xlu1 %v1866_v39  ;;  %1074 = vperm.xlu2 %1529, %v300_v7  }
 0x1ad   :  { %489 = vperm.xlu1 %1524, %v300_v7   ;;  %v1078_v7 = vadd.f32 %v2132_v58, %v2062_v11 }
 0x1b3   :  { %v953_v12 = vpop.permute.xlu2 %952 }
 0x1b4   :  { %v968_v18 = vadd.f32 %v2070_v14, %v953_v12 }
 0x1b8   :  { %v621_v15 = vpop.permute.xlu1 %620 }
 0x1b9   :  { %v478_v16 = vpop.permute.xlu0 %477  ;;  %v636_v25 = vadd.f32 %v2077_v20, %v621_v15 }
 0x1ba   :  { %v493_v17 = vadd.f32 %v2067_v13, %v478_v16 }
 0x1bc   :  { %1537 = vtanh.f32 %v493_v17  ;;  %v2074_v19 = vpop.permute.xlu2 %404 }
 0x1bd   :  { %1539 = vtanh.f32 %v968_v18 }
 0x1be   :  { %1541 = vtanh.f32 %v636_v25 }
 0x1bf   :  { %1543 = vtanh.f32 %v418_v32 }
 0x1c2   :  { %v1538_v21 = vpop.eup %1537  ;;  %v1173_v22 = vpop.permute.xlu1 %1172 }
 0x1c3   :  { %v731_v23 = vpop.permute.xlu0 %730  ;;  %v2086_v26 = vadd.f32 %v1538_v21, %v2082_v24  ;;  %v1540_v29 = vpop.eup %1539  ;;  %v1188_v43 = vadd.f32 %v2103_v35, %v1173_v22 }
 0x1c4   :  { %v2100_v34 = vadd.f32 %v1540_v29, %v2082_v24  ;;  %v1542_v39 = vpop.eup %1541  ;;  %v746_v49 = vadd.f32 %v2111_v44, %v731_v23  ;;  %v419_v29 = vadd.f32 %v2089_v27, %v2074_v19 }
 0x1c5   :  { %v505_v28 = vsel %vm237_vm0, %v2086_v26, -inf  ;;  %v2116_v46 = vadd.f32 %v1542_v39, %v2082_v24  ;;  %v1544_v48 = vpop.eup %1543 }
 0x1c6   :  { %v2093_v30 = vpop.permute.xlu2 %1176  ;;  %506 = vmax.xlane.f32.xlu0 %v505_v28  ;;  %v980_v41 = vsel %vm237_vm0, %v2100_v34, -inf  ;;  %v2145_v1 = vadd.f32 %v1544_v48, %v2082_v24 }
 0x1c7   :  { %v379_v31 = vpop.f32.mrf.mxu1  ;;  %v648_v51 = vsel %vm237_vm0, %v2116_v46, -inf  ;;  %v1189_v25 = vadd.f32 %v2103_v35, %v2093_v30 }
 0x1c8   :  { %v430_v9 = vsel %vm237_vm0, %v2145_v1, -inf }
 0x1cb   :  { %v625_v36 = vpop.permute.xlu1 %624 }
 0x1cc   :  { %v637_v37 = vadd.f32 %v2077_v20, %v625_v36  ;;  %v841_v38 = vpop.permute.xlu0 %840 }
 0x1cd   :  { %v856_v40 = vadd.f32 %v2097_v33, %v841_v38  ;;  %v360_v42 = vpop.f32.mrf.mxu3 }
 0x1ce   :  { %1545 = vtanh.f32 %v637_v37  ;;  %981 = vmax.xlane.f32.xlu0 %v980_v41  ;;  %v2126_v54 = vpack.c.bf16 %v379_v31, %v360_v42 }
 0x1cf   :  { %1547 = vtanh.f32 %v856_v40  ;;  %v2113_v45 = vpop.permute.xlu2 %485  ;;  %v381_v47 = vpop.f32.mrf.mxu1 }
 0x1d0   :  { %1549 = vtanh.f32 %v1188_v43  ;;  %v914_v3 = vunpack.c.h.b16 %v2126_v54 }
 0x1d1   :  { %1551 = vtanh.f32 %v746_v49 }
 0x1d4   :  { %v1546_v50 = vpop.eup %1545 }
 0x1d5   :  { %v1548_v53 = vpop.eup %1547  ;;  %649 = vmax.xlane.f32.xlu2 %v648_v51  ;;  %v735_v55 = vpop.permute.xlu1 %734  ;;  %v2129_v57 = vadd.f32 %v1546_v50, %v2124_v52 }
 0x1d6   :  { %v482_v56 = vpop.permute.xlu0 %481  ;;  %v362_v59 = vpop.f32.mrf.mxu3  ;;  %v2135_v60 = vadd.f32 %v1548_v53, %v2082_v24  ;;  %v747_v17 = vadd.f32 %v2111_v44, %v735_v55 }
 0x1d7   :  { %v494_v61 = vadd.f32 %v2067_v13, %v482_v56  ;;  %v2138_v62 = vpack.c.bf16 %v381_v47, %v362_v59  ;;  %v651_v63 = vsel %vm237_vm0, %v2129_v57, -inf  ;;  %v1550_v2 = vpop.eup %1549 }
 0x1d8   :  { %v868_v0 = vsel %vm237_vm0, %v2135_v60, -inf  ;;  %652 = vmax.xlane.f32.xlu0 %v651_v63  ;;  %v384_v6 = vpop.f32.mrf.mxu1  ;;  %v2158_v10 = vadd.f32 %v1550_v2, %v2082_v24  ;;  %v1552_v12 = vpop.eup %1551 }
 0x1d9   :  { %v915_v4 = vunpack.c.h.b16 %v2138_v62  ;;  %v2149_v5 = vpop.permute.xlu2 %628  ;;  %869 = vmax.xlane.f32.xlu1 %v868_v0  ;;  %1553 = vtanh.f32 %v494_v61  ;;  %v2165_v22 = vadd.f32 %v1552_v12, %v2082_v24  ;;  %v556_v59 = vunpack.c.l.b16 %v2138_v62 }
 0x1da   :  { %1555 = vtanh.f32 %v1078_v7  ;;  %v1200_v11 = vsel %vm237_vm0, %v2158_v10, -inf }
 0x1db   :  { %v2153_v8 = vpack.c.b16 %v915_v4, %v914_v3  ;;  %v758_v32 = vsel %vm237_vm0, %v2165_v22, -inf }
 0x1dd   :  { %431 = vmax.xlane.f32.xlu2 %v430_v9  ;;  %v555_v9 = vunpack.c.l.b16 %v2126_v54  ;;  %v2217_v54 = vld [vmem:[%s2663_s2 + $0x18] sm:$0xff] }
 0x1de   :  { %v845_v15 = vpop.permute.xlu1 %844  ;;  %v365_v16 = vpop.f32.mrf.mxu3 }
 0x1df   :  { %v857_v18 = vadd.f32 %v2097_v33, %v845_v15  ;;  %v957_v21 = vpop.permute.xlu0 %956  ;;  %v1554_v23 = vpop.eup %1553  ;;  %v391_v31 = vpack.c.bf16 %v384_v6, %v365_v16  ;;  %v2207_v15 = vpack.c.b16 %v556_v59, %v555_v9 }
 0x1e0   :  { %v386_v36 = vpop.f32.mrf.mxu1  ;;  %v2176_v37 = vadd.f32 %v1554_v23, %v2124_v52  ;;  %v1556_v38 = vpop.eup %1555  ;;  %v969_v0 = vadd.f32 %v2070_v14, %v957_v21  ;;  %v495_v23 = vadd.f32 %v2067_v13, %v2113_v45 }
 0x1e1   :  { %1557 = vtanh.f32 %v857_v18  ;;  %1201 = vmax.xlane.f32.xlu1 %v1200_v11  ;;  %v557_v40 = vunpack.c.l.b16 %v391_v31  ;;  %v916_v41 = vunpack.c.h.b16 %v391_v31  ;;  %v2184_v49 = vadd.f32 %v1556_v38, %v2082_v24 }
 0x1e2   :  { %v2169_v28 = vpop.permute.xlu2 %1070  ;;  %1559 = vtanh.f32 %v747_v17  ;;  %v508_v47 = vsel %vm237_vm0, %v2176_v37, -inf }
 0x1e3   :  { %1561 = vtanh.f32 %v1189_v25  ;;  %v1090_v6 = vsel %vm237_vm0, %v2184_v49, -inf }
 0x1e4   :  { %1563 = vtanh.f32 %v419_v29 }
 0x1e5   :  { %759 = vmax.xlane.f32.xlu2 %v758_v32 }
 0x1e6   :  { %v367_v30 = vpop.f32.mrf.mxu3 }
 0x1e7   :  { %v1558_v39 = vpop.eup %1557  ;;  %v392_v42 = vpack.c.bf16 %v386_v36, %v367_v30 }
 0x1e8   :  { %v1067_v43 = vpop.permute.xlu1 %1066  ;;  %v633_v19 = vpop.permute.xlu0 %632  ;;  %v2181_v48 = vadd.f32 %v1558_v39, %v2124_v52 }
 0x1e9   :  { %v1560_v50 = vpop.eup %1559  ;;  %v1079_v51 = vadd.f32 %v2132_v58, %v1067_v43  ;;  %v639_v53 = vadd.f32 %v2077_v20, %v633_v19  ;;  %v558_v55 = vunpack.c.l.b16 %v392_v42  ;;  %v917_v56 = vunpack.c.h.b16 %v392_v42  ;;  %509 = vmax.xlane.f32.xlu1 %v508_v47 }
 0x1ea   :  { %v871_v61 = vsel %vm237_vm0, %v2181_v48, -inf  ;;  %v1562_v63 = vpop.eup %1561  ;;  %v2200_v62 = vadd.f32 %v1560_v50, %v2124_v52  ;;  %v638_v42 = vadd.f32 %v2077_v20, %v2149_v5 }
 0x1eb   :  { %1565 = vtanh.f32 %v1079_v51  ;;  %v2192_v2 = vpack.c.b16 %v558_v55, %v557_v40  ;;  %v2194_v24 = vpack.c.b16 %v917_v56, %v916_v41  ;;  %v415_v3 = vpop.permute.xlu2 %414  ;;  %872 = vmax.xlane.f32.xlu0 %v871_v61  ;;  %v1564_v7 = vpop.eup %1563  ;;  %v2205_v12 = vadd.f32 %v1562_v63, %v2124_v52 }
 0x1ec   :  { %1567 = vtanh.f32 %v639_v53  ;;  %v421_v4 = vadd.f32 %v2089_v27, %v415_v3  ;;  %v761_v16 = vsel %vm237_vm0, %v2200_v62, -inf  ;;  %v2212_v17 = vadd.f32 %v1564_v7, %v2124_v52  ;;  %v395_v53 = vld [vmem:[%s2663_s2 + $0x10] sm:$0xff]  ;;  %s1873_s2 = smov 96  }
 0x1ed   :  { %1091 = vmax.xlane.f32.xlu2 %v1090_v6  ;;  %606 = vmatpush.bf16.msrb.mxu0 %v2192_v2  ;;  %v1203_v25 = vsel %vm237_vm0, %v2205_v12, -inf }
 0x1ee   :  { %1569 = vtanh.f32 %v421_v4  ;;  %v433_v36 = vsel %vm237_vm0, %v2212_v17, -inf }
 0x1ef   :  { %1571 = vtanh.f32 %v969_v0 }
 0x1f0   :  { %1573 = vtanh.f32 %v495_v23 }
 0x1f1   :  { %v1566_v18 = vpop.eup %1565  ;;  %v410_v21 = vpop.permute.xlu1 %409  ;;  %762 = vmax.xlane.f32.xlu1 %v761_v16  ;;  %607 = vmatpush.bf16.msrb.mxu0 %v2207_v15 }
 0x1f2   :  { %v1568_v11 = vpop.eup %1567  ;;  %v2230_v38 = vadd.f32 %v1566_v18, %v2124_v52 }
 0x1f3   :  { %1204 = vmax.xlane.f32.xlu0 %v1203_v25  ;;  %v2225_v29 = vadd.f32 %v1568_v11, %v2217_v54 }
 0x1f4   :  { %v1570_v31 = vpop.eup %1569  ;;  %v743_v32 = vpop.permute.xlu2 %742  ;;  %v1093_v40 = vsel %vm237_vm0, %v2230_v38, -inf }
 0x1f5   :  { %v1572_v30 = vpop.eup %1571  ;;  %v749_v39 = vadd.f32 %v2111_v44, %v743_v32  ;;  %434 = vmax.xlane.f32.xlu2 %v433_v36  ;;  %v2234_v45 = vadd.f32 %v1570_v31, %v2217_v54 }
 0x1f6   :  { %v2239_v41 = vadd.f32 %v1572_v30, %v2124_v52  ;;  %v1574_v19 = vpop.eup %1573  ;;  %v1080_v52 = vadd.f32 %v2132_v58, %v2169_v28 }
 0x1f7   :  { %1575 = vtanh.f32 %v749_v39  ;;  %v2254_v20 = vadd.f32 %v1574_v19, %v395_v53 }
 0x1f8   :  { %v983_v50 = vsel %vm237_vm0, %v2239_v41, -inf }
 0x1f9   :  { %1094 = vmax.xlane.f32.xlu1 %v1093_v40  ;;  %v511_v61 = vsel %vm237_vm0, %v2254_v20, -inf }
 0x1fb   :  { %v739_v43 = vpop.permute.xlu1 %738 }
 0x1fc   :  { %v748_v47 = vadd.f32 %v2111_v44, %v739_v43  ;;  %v420_v44 = vadd.f32 %v2089_v27, %v410_v21 }
 0x1fd   :  { %v1576_v51 = vpop.eup %1575  ;;  %984 = vmax.xlane.f32.xlu2 %v983_v50  ;;  %v853_v5 = vpop.permute.xlu2 %852 }
 0x1fe   :  { %1577 = vtanh.f32 %v748_v47  ;;  %v2252_v55 = vadd.f32 %v1576_v51, %v2217_v54  ;;  %v859_v28 = vadd.f32 %v2097_v33, %v853_v5 }
 0x1ff   :  { %1579 = vtanh.f32 %v638_v42 }
 0x200   :  { %1581 = vtanh.f32 %v1080_v52 }
 0x201   :  { %1583 = vtanh.f32 %v420_v44  ;;  %v965_v44 = vpop.permute.xlu0 %964 }
 0x202   :  { %1585 = vtanh.f32 %v859_v28 }
 0x204   :  { %v1578_v56 = vpop.eup %1577  ;;  %v849_v59 = vpop.permute.xlu1 %848 }
 0x205   :  { %v1580_v63 = vpop.eup %1579  ;;  %512 = vmax.xlane.f32.xlu2 %v511_v61  ;;  %v2259_v0 = vadd.f32 %v1578_v56, %v395_v53  ;;  %v858_v27 = vadd.f32 %v2097_v33, %v849_v59 }
 0x206   :  { %v1582_v4 = vpop.eup %1581  ;;  %v2264_v6 = vadd.f32 %v1580_v63, %v395_v53 }
 0x207   :  { %v764_v3 = vsel %vm237_vm0, %v2259_v0, -inf  ;;  %v2267_v7 = vadd.f32 %v1582_v4, %v395_v53  ;;  %v1584_v16 = vpop.eup %1583  ;;  %1587 = vtanh.f32 %v858_v27 }
 0x208   :  { %765 = vmax.xlane.f32.xlu1 %v764_v3  ;;  %v654_v9 = vsel %vm237_vm0, %v2264_v6, -inf  ;;  %v1586_v23 = vpop.eup %1585  ;;  %v2274_v25 = vadd.f32 %v1584_v16, %v395_v53 }
 0x209   :  { %v1096_v11 = vsel %vm237_vm0, %v2267_v7, -inf  ;;  %v2277_v33 = vadd.f32 %v1586_v23, %v2217_v54  ;;  %v1185_v56 = vpop.permute.xlu0 %1184 }
 0x20a   :  { %v436_v31 = vsel %vm237_vm0, %v2274_v25, -inf }
 0x20b   :  { %v877_v40 = vsel %vm237_vm0, %v2277_v33, -inf }
 0x20d   :  { %v961_v18 = vpop.permute.xlu1 %960  ;;  %655 = vmax.xlane.f32.xlu2 %v654_v9  ;;  %v1588_v32 = vpop.eup %1587 }
 0x20e   :  { %v970_v21 = vadd.f32 %v2070_v14, %v961_v18  ;;  %v2286_v43 = vadd.f32 %v1588_v32, %v395_v53 }
 0x210   :  { %1589 = vtanh.f32 %v970_v21  ;;  %1097 = vmax.xlane.f32.xlu1 %v1096_v11  ;;  %v874_v47 = vsel %vm237_vm0, %v2286_v43, -inf }
 0x215   :  { %437 = vmax.xlane.f32.xlu2 %v436_v31 }
 0x216   :  { %v1590_v36 = vpop.eup %1589  ;;  %v1181_v30 = vpop.permute.xlu1 %1180 }
 0x217   :  { %v1190_v39 = vadd.f32 %v2103_v35, %v1181_v30  ;;  %v2284_v42 = vadd.f32 %v1590_v36, %v395_v53 }
 0x218   :  { %878 = vmax.xlane.f32.xlu1 %v877_v40 }
 0x219   :  { %1591 = vtanh.f32 %v1190_v39  ;;  %v986_v19 = vsel %vm237_vm0, %v2284_v42, -inf }
 0x21a   :  { %987 = vmax.xlane.f32.xlu0 %v986_v19 }
 0x21d   :  { %875 = vmax.xlane.f32.xlu2 %v874_v47 }
 0x21f   :  { %v1592_v50 = vpop.eup %1591  ;;  %v490_v59 = vpop.permute.xlu1 %489 }
 0x220   :  { %v2292_v51 = vadd.f32 %v1592_v50, %v395_v53  ;;  %v1075_v53 = vpop.permute.xlu2 %1074  ;;  %v496_v61 = vadd.f32 %v2067_v13, %v490_v59 }
 0x222   :  { %v1206_v52 = vsel %vm237_vm0, %v2292_v51, -inf  ;;  %1593 = vtanh.f32 %v496_v61  ;;  %v971_v61 = vadd.f32 %v2070_v14, %v965_v44  ;;  %v767_v14 = vsel %vm237_vm0, %v2252_v55, -inf }
 0x223   :  { %1207 = vmax.xlane.f32.xlu0 %v1206_v52  ;;  %v657_v52 = vsel %vm237_vm0, %v2225_v29, -inf }
 0x228   :  { %v1594_v27 = vpop.eup %1593 }
 0x229   :  { %v2322_v16 = vadd.f32 %v1594_v27, %v2217_v54 }
 0x22b   :  { %v514_v11 = vsel %vm237_vm0, %v2322_v16, -inf }
 0x231   :  { %563 = vrot.lane.b32.xlu1 %v2192_v2, %s1873_s2 }
 0x235   :  { %694 = vrot.lane.b32.xlu2 %v2207_v15, %s1858_s21 }
 0x237   :  { %561 = vrot.lane.b32.xlu0 %v2207_v15, %s1873_s2 }
 0x239   :  { %806 = vrot.lane.b32.xlu1 %v2192_v2, %s1874_s23  ;;  %v2315_v28 = vpop.xlane.xlu0 %506 }
 0x23d   :  { %804 = vrot.lane.b32.xlu2 %v2207_v15, %s1874_s23  ;;  %v1081_v15 = vadd.f32 %v2132_v58, %v1075_v53 }
 0x23f   :  { %1595 = vtanh.f32 %v1081_v15 }
 0x241   :  { %1138 = vrot.lane.b32.xlu1 %v2194_v24, %s1858_s21  ;;  %v982_v21 = vpop.xlane.xlu0 %981 }
 0x242   :  { %v992_v58 = vsub.f32 %v2100_v34, %v982_v21 }
 0x244   :  { %v996_v32 = vmul.f32 1.442695, %v992_v58 }
 0x245   :  { %1136 = vrot.lane.b32.xlu2 %v2153_v8, %s1858_s21  ;;  %v1596_v23 = vpop.eup %1595 }
 0x248   :  { %v2310_v5 = vpop.xlane.xlu2 %649 }
 0x24b   :  { %v653_v36 = vpop.xlane.xlu0 %652 }
 0x24c   :  { %v2318_v3 = vpop.xlane.xlu1 %869  ;;  %v661_v40 = vsub.f32 %v2129_v57, %v653_v36 }
 0x24e   :  { %v666_v50 = vmul.f32 1.442695, %v661_v40 }
 0x250   :  { %v2313_v63 = vpop.xlane.xlu2 %431 }
 0x254   :  { %v2329_v31 = vpop.xlane.xlu1 %1201 }
 0x258   :  { %v760_v4 = vpop.xlane.xlu2 %759 }
 0x259   :  { %v770_v9 = vsub.f32 %v2165_v22, %v760_v4  ;;  %v2332_v22 = vadd.f32 %v1596_v23, %v2217_v54  ;;  %v439_v4 = vsel %vm237_vm0, %v2234_v45, -inf }
 0x25b   :  { %v774_v18 = vmul.f32 1.442695, %v770_v9  ;;  %v1099_v39 = vsel %vm237_vm0, %v2332_v22, -inf }
 0x25c   :  { %v2343_v47 = vpop.xlane.xlu1 %509 }
 0x25d   :  { %1597 = vpow2.f32 %v774_v18  ;;  %v1191_v18 = vadd.f32 %v2103_v35, %v1185_v56 }
 0x25e   :  { %1599 = vpow2.f32 %v996_v32  ;;  %v873_v58 = vpop.xlane.xlu0 %872 }
 0x25f   :  { %1601 = vpow2.f32 %v666_v50 }
 0x260   :  { %v2324_v13 = vpop.xlane.xlu2 %1091  ;;  %1603 = vtanh.f32 %v971_v61 }
 0x261   :  { %515 = vmax.xlane.f32.xlu0 %v514_v11  ;;  %1605 = vtanh.f32 %v1191_v18  ;;  %v442_v18 = vsub.f32 %v2145_v1, %v2313_v63 }
 0x263   :  { %v2334_v30 = vpop.eup %1597 }
 0x264   :  { %v782_v34 = vsel %vm237_vm0, %v2334_v30, 0.0  ;;  %v2347_v53 = vpop.eup %1599  ;;  %v2354_v15 = vpop.xlane.xlu1 %762 }
 0x265   :  { %v1004_v57 = vsel %vm237_vm0, %v2347_v53, 0.0  ;;  %v2358_v27 = vpop.eup %1601 }
 0x266   :  { %v675_v9 = vsel %vm237_vm0, %v2358_v27, 0.0  ;;  %v1604_v44 = vpop.eup %1603 }
 0x267   :  { %v2372_v23 = vadd.f32 %v1604_v44, %v2217_v54  ;;  %v1606_v56 = vpop.eup %1605 }
 0x268   :  { %v2339_v19 = vpop.xlane.xlu2 %434 }
 0x269   :  { %1100 = vmax.xlane.f32.xlu0 %v1099_v39  ;;  %v989_v35 = vsel %vm237_vm0, %v2372_v23, -inf  ;;  %v2381_v39 = vadd.f32 %v1606_v56, %v2217_v54 }
 0x26b   :  { %783 = vadd.xlane.f32.xlu1 %v782_v34  ;;  %v1209_v40 = vsel %vm237_vm0, %v2381_v39, -inf  ;;  %v2385_v34 = vpop.xlane.xlu0 %1204 }
 0x26c   :  { %v2369_v11 = vpop.xlane.xlu1 %1094 }
 0x26e   :  { %658 = vmax.xlane.f32.xlu2 %v657_v52 }
 0x270   :  { %v2351_v59 = vpop.xlane.xlu2 %984 }
 0x273   :  { %1005 = vadd.xlane.f32.xlu1 %v1004_v57  ;;  %v517_v57 = vsub.f32 %v2086_v26, %v2315_v28  ;;  %v1102_v26 = vsub.f32 %v2184_v49, %v2324_v13  ;;  %v1212_v49 = vsub.f32 %v2158_v10, %v2329_v31 }
 0x275   :  { %v1106_v1 = vmul.f32 1.442695, %v1102_v26 }
 0x276   :  { %440 = vmax.xlane.f32.xlu2 %v439_v4  ;;  %v521_v4 = vmul.f32 1.442695, %v517_v57 }
 0x278   :  { %v2363_v21 = vpop.xlane.xlu2 %512  ;;  %1607 = vpow2.f32 %v521_v4 }
 0x27b   :  { %676 = vadd.xlane.f32.xlu1 %v675_v9  ;;  %v2376_v32 = vpop.xlane.xlu1 %765 }
 0x27d   :  { %1028 = vrot.lane.b32.xlu0 %v2194_v24, %s1873_s2 }
 0x27e   :  { %768 = vmax.xlane.f32.xlu2 %v767_v14  ;;  %v446_v14 = vmul.f32 1.442695, %v442_v18 }
 0x280   :  { %v2378_v36 = vpop.xlane.xlu2 %655  ;;  %1609 = vpow2.f32 %v446_v14 }
 0x281   :  { %1611 = vpow2.f32 %v1106_v1  ;;  %v881_v1 = vsub.f32 %v2181_v48, %v873_v58 }
 0x283   :  { %v2387_v50 = vpop.xlane.xlu1 %1097 }
 0x286   :  { %990 = vmax.xlane.f32.xlu2 %v989_v35  ;;  %v2403_v35 = vpop.eup %1607 }
 0x287   :  { %v2413_v57 = vpop.eup %1609 }
 0x288   :  { %v2389_v52 = vpop.xlane.xlu2 %437  ;;  %v454_v13 = vsel %vm237_vm0, %v2413_v57, 0.0  ;;  %v2421_v14 = vpop.eup %1611 }
 0x289   :  { %v1114_v26 = vsel %vm237_vm0, %v2421_v14, 0.0 }
 0x28b   :  { %v2395_v9 = vpop.xlane.xlu1 %878 }
 0x28d   :  { %v2393_v61 = vpop.xlane.xlu0 %987 }
 0x28e   :  { %1210 = vmax.xlane.f32.xlu2 %v1209_v40  ;;  %v529_v40 = vsel %vm237_vm0, %v2403_v35, 0.0 }
 0x290   :  { %v2397_v54 = vpop.xlane.xlu2 %875 }
 0x296   :  { %v2401_v44 = vpop.xlane.xlu0 %1207 }
 0x298   :  { %v2407_v28 = vpop.permute.xlu2 %694 }
 0x2a0   :  { %v805_v18 = vpop.permute.xlu2 %804 }
 0x2a3   :  { %v564_v56 = vpop.permute.xlu1 %563 }
 0x2a4   :  { %579 = vmatpush.bf16.msrb.mxu2 %v564_v56  ;;  %v771_v56 = vsub.f32 %v2200_v62, %v2354_v15  ;;  %v880_v15 = vsub.f32 %v2135_v60, %v2318_v3  ;;  %v993_v60 = vsub.f32 %v2239_v41, %v2351_v59  ;;  %v662_v41 = vsub.f32 %v2264_v6, %v2378_v36 }
 0x2a5   :  { %v1213_v6 = vsub.f32 %v2205_v12, %v2385_v34 }
 0x2a6   :  { %696 = vrot.lane.b32.xlu2 %v2192_v2, %s1858_s21  ;;  %v1216_v2 = vmul.f32 1.442695, %v1212_v49  ;;  %v776_v10 = vmul.f32 1.442695, %v771_v56  ;;  %v886_v49 = vmul.f32 1.442695, %v881_v1 }
 0x2a7   :  { %530 = vadd.xlane.f32.xlu0 %v529_v40  ;;  %v660_v40 = vsub.f32 %v2116_v46, %v2310_v5  ;;  %v884_v48 = vmul.f32 1.442695, %v880_v15  ;;  %v998_v56 = vmul.f32 1.442695, %v993_v60  ;;  %v772_v60 = vsub.f32 %v2259_v0, %v2376_v32 }
 0x2a8   :  { %1613 = vpow2.f32 %v1216_v2  ;;  %v518_v2 = vsub.f32 %v2176_v37, %v2343_v47  ;;  %v443_v37 = vsub.f32 %v2212_v17, %v2339_v19  ;;  %v2467_v15 = vpop.permute.xlu2 %1136  ;;  %v882_v0 = vsub.f32 %v2286_v43, %v2397_v54 }
 0x2a9   :  { %v562_v63 = vpop.permute.xlu0 %561  ;;  %1615 = vpow2.f32 %v776_v10 }
 0x2aa   :  { %580 = vmatpush.bf16.msrb.mxu2 %v562_v63 }
 0x2ab   :  { %v807_v4 = vpop.permute.xlu1 %806 }
 0x2ac   :  { %822 = vmatpush.bf16.msra.mxu1 %v807_v4  ;;  %v664_v4 = vmul.f32 1.442695, %v660_v40 }
 0x2ae   :  { %934 = vmatpush.bf16.msra.mxu2 %v2194_v24  ;;  %v2427_v31 = vpop.eup %1613  ;;  %1617 = vpow2.f32 %v664_v4  ;;  %v448_v4 = vmul.f32 1.442695, %v443_v37  ;;  %v778_v37 = vmul.f32 1.442695, %v772_v60 }
 0x2af   :  { %455 = vadd.xlane.f32.xlu0 %v454_v13  ;;  %v1224_v63 = vsel %vm237_vm0, %v2427_v31, 0.0  ;;  %v2434_v62 = vpop.eup %1615  ;;  %1619 = vpow2.f32 %v886_v49  ;;  %v1103_v13 = vsub.f32 %v2230_v38, %v2369_v11  ;;  %v523_v11 = vmul.f32 1.442695, %v518_v2 }
 0x2b0   :  { %823 = vmatpush.bf16.msra.mxu1 %v805_v18  ;;  %v785_v46 = vsel %vm237_vm0, %v2434_v62, 0.0  ;;  %1621 = vpow2.f32 %v884_v48  ;;  %v668_v49 = vmul.f32 1.442695, %v662_v41  ;;  %v1218_v48 = vmul.f32 1.442695, %v1213_v6 }
 0x2b1   :  { %v1108_v5 = vmul.f32 1.442695, %v1103_v13 }
 0x2b2   :  { %935 = vmatpush.bf16.msra.mxu2 %v2153_v8 }
 0x2b3   :  { %1623 = vpow2.f32 %v1108_v5 }
 0x2b4   :  { %v2442_v58 = vpop.eup %1617  ;;  %1625 = vpow2.f32 %v523_v11 }
 0x2b5   :  { %v2444_v18 = vpop.eup %1619  ;;  %v672_v3 = vsel %vm237_vm0, %v2442_v58, 0.0  ;;  %1627 = vpow2.f32 %v998_v56 }
 0x2b6   :  { %v895_v38 = vsel %vm237_vm0, %v2444_v18, 0.0 }
 0x2b7   :  { %1115 = vadd.xlane.f32.xlu0 %v1114_v26  ;;  %v2454_v26 = vpop.eup %1621 }
 0x2b8   :  { %v892_v1 = vsel %vm237_vm0, %v2454_v26, 0.0 }
 0x2b9   :  { %v2456_v10 = vpop.eup %1623 }
 0x2ba   :  { %v1117_v40 = vsel %vm237_vm0, %v2456_v10, 0.0  ;;  %v2469_v17 = vpop.eup %1625 }
 0x2bb   :  { %v2471_v19 = vpop.eup %1627  ;;  %v532_v13 = vsel %vm237_vm0, %v2469_v17, 0.0 }
 0x2bc   :  { %v1007_v36 = vsel %vm237_vm0, %v2471_v19, 0.0 }
 0x2bf   :  { %1225 = vadd.xlane.f32.xlu0 %v1224_v63 }
 0x2c7   :  { %786 = vadd.xlane.f32.xlu0 %v785_v46 }
 0x2cf   :  { %896 = vadd.xlane.f32.xlu0 %v895_v38  ;;  %673 = vadd.xlane.f32.xlu2 %v672_v3 }
 0x2d4   :  { %v516_v47 = vpop.xlane.xlu0 %515 }
 0x2d5   :  { %v520_v59 = vsub.f32 %v2322_v16, %v516_v47  ;;  %v444_v16 = vsub.f32 %v2274_v25, %v2389_v52  ;;  %v519_v52 = vsub.f32 %v2254_v20, %v2363_v21 }
 0x2d7   :  { %v527_v63 = vmul.f32 1.442695, %v520_v59  ;;  %1118 = vadd.xlane.f32.xlu0 %v1117_v40  ;;  %893 = vadd.xlane.f32.xlu2 %v892_v1  ;;  %v450_v12 = vmul.f32 1.442695, %v444_v16  ;;  %v525_v56 = vmul.f32 1.442695, %v519_v52  ;;  %v883_v52 = vsub.f32 %v2277_v33, %v2395_v9 }
 0x2d9   :  { %1629 = vpow2.f32 %v527_v63 }
 0x2da   :  { %1631 = vpow2.f32 %v448_v4 }
 0x2db   :  { %1633 = vpow2.f32 %v668_v49 }
 0x2dc   :  { %1635 = vpow2.f32 %v1218_v48  ;;  %v1101_v11 = vpop.xlane.xlu0 %1100 }
 0x2dd   :  { %1637 = vpow2.f32 %v450_v12 }
 0x2de   :  { %1639 = vpow2.f32 %v525_v56  ;;  %v890_v56 = vmul.f32 1.442695, %v883_v52 }
 0x2df   :  { %v2481_v46 = vpop.eup %1629  ;;  %1008 = vadd.xlane.f32.xlu0 %v1007_v36  ;;  %533 = vadd.xlane.f32.xlu2 %v532_v13  ;;  %1641 = vpow2.f32 %v778_v37 }
 0x2e0   :  { %v538_v5 = vsel %vm237_vm0, %v2481_v46, 0.0  ;;  %v2485_v2 = vpop.eup %1631 }
 0x2e1   :  { %539 = vadd.xlane.f32.xlu1 %v538_v5  ;;  %v659_v34 = vpop.xlane.xlu2 %658  ;;  %v2487_v25 = vpop.eup %1633  ;;  %v457_v3 = vsel %vm237_vm0, %v2485_v2, 0.0 }
 0x2e2   :  { %v678_v38 = vsel %vm237_vm0, %v2487_v25, 0.0  ;;  %v2497_v41 = vpop.eup %1635  ;;  %v663_v59 = vsub.f32 %v2225_v29, %v659_v34  ;;  %v994_v29 = vsub.f32 %v2284_v42, %v2393_v61 }
 0x2e3   :  { %v2500_v21 = vpop.eup %1637  ;;  %v1227_v1 = vsel %vm237_vm0, %v2497_v41, 0.0 }
 0x2e4   :  { %v460_v40 = vsel %vm237_vm0, %v2500_v21, 0.0  ;;  %v670_v4 = vmul.f32 1.442695, %v663_v59  ;;  %v2509_v6 = vpop.eup %1639  ;;  %v1000_v5 = vmul.f32 1.442695, %v994_v29 }
 0x2e5   :  { %v2511_v43 = vpop.eup %1641  ;;  %v535_v48 = vsel %vm237_vm0, %v2509_v6, 0.0 }
 0x2e6   :  { %v788_v13 = vsel %vm237_vm0, %v2511_v43, 0.0 }
 0x2e7   :  { %679 = vadd.xlane.f32.xlu0 %v678_v38  ;;  %458 = vadd.xlane.f32.xlu2 %v457_v3 }
 0x2e9   :  { %v441_v47 = vpop.xlane.xlu2 %440 }
 0x2ea   :  { %v445_v20 = vsub.f32 %v2234_v45, %v441_v47  ;;  %v888_v45 = vmul.f32 1.442695, %v882_v0 }
 0x2ec   :  { %v452_v32 = vmul.f32 1.442695, %v445_v20 }
 0x2ee   :  { %1643 = vpow2.f32 %v452_v32 }
 0x2ef   :  { %461 = vadd.xlane.f32.xlu0 %v460_v40  ;;  %v1029_v63 = vpop.permute.xlu0 %1028  ;;  %1228 = vadd.xlane.f32.xlu2 %v1227_v1  ;;  %1645 = vpow2.f32 %v888_v45  ;;  %v1214_v40 = vsub.f32 %v2292_v51, %v2401_v44 }
 0x2f0   :  { %1044 = vmatpush.bf16.msra.mxu0 %v1029_v63  ;;  %1647 = vpow2.f32 %v670_v4  ;;  %v1139_v63 = vpop.permute.xlu1 %1138 }
 0x2f1   :  { %v769_v49 = vpop.xlane.xlu2 %768  ;;  %1649 = vpow2.f32 %v1000_v5  ;;  %v1220_v45 = vmul.f32 1.442695, %v1214_v40 }
 0x2f2   :  { %v773_v16 = vsub.f32 %v2252_v55, %v769_v49  ;;  %v1105_v55 = vsub.f32 %v2332_v22, %v1101_v11 }
 0x2f4   :  { %v2513_v54 = vpop.eup %1643  ;;  %v780_v12 = vmul.f32 1.442695, %v773_v16  ;;  %v1112_v3 = vmul.f32 1.442695, %v1105_v55 }
 0x2f5   :  { %v463_v36 = vsel %vm237_vm0, %v2513_v54, 0.0  ;;  %v2524_v42 = vpop.eup %1645 }
 0x2f6   :  { %464 = vadd.xlane.f32.xlu1 %v463_v36  ;;  %v2526_v61 = vpop.eup %1647  ;;  %1651 = vpow2.f32 %v780_v12  ;;  %v898_v60 = vsel %vm237_vm0, %v2524_v42, 0.0  ;;  %v1104_v36 = vsub.f32 %v2267_v7, %v2387_v50 }
 0x2f7   :  { %789 = vadd.xlane.f32.xlu0 %v788_v13  ;;  %536 = vadd.xlane.f32.xlu2 %v535_v48  ;;  %v681_v38 = vsel %vm237_vm0, %v2526_v61, 0.0  ;;  %v2535_v47 = vpop.eup %1649  ;;  %1653 = vpow2.f32 %v1112_v3 }
 0x2f8   :  { %1655 = vpow2.f32 %v890_v56  ;;  %v1010_v33 = vsel %vm237_vm0, %v2535_v47, 0.0  ;;  %v1110_v13 = vmul.f32 1.442695, %v1104_v36 }
 0x2f9   :  { %v991_v34 = vpop.xlane.xlu2 %990 }
 0x2fa   :  { %v995_v22 = vsub.f32 %v2372_v23, %v991_v34 }
 0x2fc   :  { %v2537_v20 = vpop.eup %1651  ;;  %v1002_v11 = vmul.f32 1.442695, %v995_v22 }
 0x2fd   :  { %v791_v9 = vsel %vm237_vm0, %v2537_v20, 0.0  ;;  %v2544_v32 = vpop.eup %1653 }
 0x2fe   :  { %899 = vadd.xlane.f32.xlu1 %v898_v60  ;;  %v2546_v59 = vpop.eup %1655  ;;  %1657 = vpow2.f32 %v1002_v11  ;;  %v1123_v23 = vsel %vm237_vm0, %v2544_v32, 0.0 }
 0x2ff   :  { %682 = vadd.xlane.f32.xlu0 %v681_v38  ;;  %v901_v1 = vsel %vm237_vm0, %v2546_v59, 0.0  ;;  %1659 = vpow2.f32 %v1220_v45 }
 0x300   :  { %1661 = vpow2.f32 %v1110_v13 }
 0x301   :  { %v1211_v37 = vpop.xlane.xlu2 %1210 }
 0x302   :  { %v1215_v12 = vsub.f32 %v2381_v39, %v1211_v37 }
 0x304   :  { %v2557_v4 = vpop.eup %1657  ;;  %v1222_v52 = vmul.f32 1.442695, %v1215_v12 }
 0x305   :  { %v1013_v51 = vsel %vm237_vm0, %v2557_v4, 0.0  ;;  %v2564_v44 = vpop.eup %1659 }
 0x306   :  { %1011 = vadd.xlane.f32.xlu1 %v1010_v33  ;;  %v1230_v49 = vsel %vm237_vm0, %v2564_v44, 0.0  ;;  %v2579_v34 = vpop.eup %1661 }
 0x307   :  { %792 = vadd.xlane.f32.xlu0 %v791_v9  ;;  %v1120_v60 = vsel %vm237_vm0, %v2579_v34, 0.0 }
 0x309   :  { %v697_v0 = vpop.permute.xlu2 %696 }
 0x30a   :  { %712 = vmatpush.bf16.msra.mxu3 %v697_v0 }
 0x30e   :  { %713 = vmatpush.bf16.msra.mxu3 %v2407_v28  ;;  %1124 = vadd.xlane.f32.xlu1 %v1123_v23 }
 0x30f   :  { %902 = vadd.xlane.f32.xlu0 %v901_v1  ;;  %1026 = vrot.lane.b32.xlu2 %v2153_v8, %s1873_s2 }
 0x312   :  { %1154 = vmatpush.bf16.msrb.mxu3 %v1139_v63 }
 0x316   :  { %1155 = vmatpush.bf16.msrb.mxu3 %v2467_v15  ;;  %1014 = vadd.xlane.f32.xlu1 %v1013_v51  ;;  %v784_v15 = vpop.xlane.xlu1 %783 }
 0x317   :  { %1248 = vrot.lane.b32.xlu2 %v2194_v24, %s1874_s23  ;;  %1663 = vrcp.f32 %v784_v15 }
 0x31a   :  { %v531_v28 = vpop.xlane.xlu0 %530 }
 0x31e   :  { %1231 = vadd.xlane.f32.xlu1 %v1230_v49  ;;  %v2576_v24 = vpop.xlane.xlu1 %1005 }
 0x322   :  { %v456_v29 = vpop.xlane.xlu0 %455 }
 0x323   :  { %1246 = vrot.lane.b32.xlu0 %v2153_v8, %s1874_s23  ;;  %v1664_v8 = vpop.eup %1663 }
 0x324   :  { %v798_v50 = vmul.f32 %v1664_v8, %v2334_v30 }
 0x326   :  { %v677_v55 = vpop.xlane.xlu1 %676 }
 0x32a   :  { %v2570_v16 = vpop.xlane.xlu0 %1115 }
 0x332   :  { %v2574_v48 = vpop.xlane.xlu0 %1225 }
 0x33a   :  { %v787_v5 = vpop.xlane.xlu0 %786 }
 0x33b   :  { %1665 = vrcp.f32 %v787_v5 }
 0x33c   :  { %1667 = vrcp.f32 %v677_v55 }
 0x33d   :  { %1669 = vpow2.f32 %v1222_v52 }
 0x340   :  { %1121 = vadd.xlane.f32.xlu2 %v1120_v60 }
 0x341   :  { %v1666_v7 = vpop.eup %1665 }
 0x342   :  { %v799_v38 = vmul.f32 %v1666_v7, %v2434_v62  ;;  %v2585_v3 = vpop.xlane.xlu0 %896  ;;  %v674_v56 = vpop.xlane.xlu2 %673 }
 0x343   :  { %1671 = vrcp.f32 %v674_v56  ;;  %v1668_v37 = vpop.eup %1667 }
 0x344   :  { %v802_v39 = vpack.c.bf16 %v799_v38, %v798_v50  ;;  %v2588_v22 = vpop.eup %1669  ;;  %v689_v30 = vmul.f32 %v1668_v37, %v2358_v27  ;;  %1673 = vrcp.f32 %v531_v28 }
 0x345   :  { %v1233_v62 = vsel %vm237_vm0, %v2588_v22, 0.0 }
 0x346   :  { %1451 = vmatmul.msk.bf16.vlgmr.msra.gmra.mxu1 %vm237_vm0, %v802_v39 }
 0x349   :  { %v1672_v33 = vpop.eup %1671 }
 0x34a   :  { %v2590_v9 = vpop.xlane.xlu0 %1118  ;;  %v894_v11 = vpop.xlane.xlu2 %893  ;;  %v688_v0 = vmul.f32 %v1672_v33, %v2442_v58 }
 0x34b   :  { %v1674_v63 = vpop.eup %1673 }
 0x34c   :  { %v692_v40 = vpack.c.bf16 %v689_v30, %v688_v0  ;;  %v545_v27 = vmul.f32 %v1674_v63, %v2403_v35 }
 0x34d   :  { %1234 = vadd.xlane.f32.xlu0 %v1233_v62 }
 0x34e   :  { %1449 = vmatmul.msk.bf16.vlgmr.msra.gmra.mxu3 %vm237_vm0, %v692_v40 }
 0x352   :  { %v1009_v23 = vpop.xlane.xlu0 %1008  ;;  %v534_v1 = vpop.xlane.xlu2 %533 }
 0x353   :  { %1675 = vrcp.f32 %v534_v1 }
 0x354   :  { %1677 = vrcp.f32 %v456_v29  ;;  %v540_v13 = vpop.xlane.xlu1 %539 }
 0x359   :  { %v1676_v45 = vpop.eup %1675 }
 0x35a   :  { %v680_v51 = vpop.xlane.xlu0 %679  ;;  %v459_v49 = vpop.xlane.xlu2 %458  ;;  %v546_v58 = vmul.f32 %v1676_v45, %v2469_v17 }
 0x35b   :  { %1679 = vrcp.f32 %v459_v49  ;;  %v1678_v36 = vpop.eup %1677 }
 0x35c   :  { %v549_v15 = vpack.c.bf16 %v546_v58, %v545_v27  ;;  %v470_v8 = vmul.f32 %v1678_v36, %v2413_v57 }
 0x35e   :  { %1445 = vmatmul.msk.bf16.vlgmr.msrb.gmra.mxu2 %vm237_vm0, %v549_v15 }
 0x361   :  { %v1680_v5 = vpop.eup %1679 }
 0x362   :  { %v462_v28 = vpop.xlane.xlu0 %461  ;;  %v2600_v12 = vpop.xlane.xlu2 %1228  ;;  %v471_v29 = vmul.f32 %v1680_v5, %v2485_v2 }
 0x363   :  { %1681 = vrcp.f32 %v462_v28 }
 0x364   :  { %v474_v55 = vpack.c.bf16 %v471_v29, %v470_v8  ;;  %1683 = vrcp.f32 %v540_v13 }
 0x366   :  { %1447 = vmatmul.msk.bf16.vlgmr.msrb.gmra.mxu0 %vm237_vm0, %v474_v55 }
 0x369   :  { %v465_v35 = vpop.xlane.xlu1 %464  ;;  %v1682_v60 = vpop.eup %1681 }
 0x36a   :  { %v790_v17 = vpop.xlane.xlu0 %789  ;;  %1685 = vrcp.f32 %v465_v35  ;;  %v537_v52 = vpop.xlane.xlu2 %536  ;;  %v472_v56 = vmul.f32 %v1682_v60, %v2500_v21 }
 0x36b   :  { %1687 = vrcp.f32 %v537_v52  ;;  %v1684_v7 = vpop.eup %1683 }
 0x36c   :  { %1689 = vrcp.f32 %v680_v51  ;;  %v548_v30 = vmul.f32 %v1684_v7, %v2481_v46 }
 0x370   :  { %v1686_v50 = vpop.eup %1685 }
 0x371   :  { %v900_v38 = vpop.xlane.xlu1 %899  ;;  %v473_v57 = vmul.f32 %v1686_v50, %v2513_v54  ;;  %v1688_v2 = vpop.eup %1687 }
 0x372   :  { %v683_v39 = vpop.xlane.xlu0 %682  ;;  %v1027_v37 = vpop.permute.xlu2 %1026  ;;  %v547_v33 = vmul.f32 %v1688_v2, %v2509_v6 }
 0x373   :  { %1691 = vrcp.f32 %v683_v39  ;;  %1045 = vmatpush.bf16.msra.mxu0 %v1027_v37  ;;  %v475_v0 = vpack.c.bf16 %v473_v57, %v472_v56  ;;  %v1690_v40 = vpop.eup %1689 }
 0x374   :  { %v550_v62 = vpack.c.bf16 %v548_v30, %v547_v33  ;;  %1693 = vrcp.f32 %v2576_v24  ;;  %v690_v46 = vmul.f32 %v1690_v40, %v2487_v25 }
 0x375   :  { %1695 = vrcp.f32 %v894_v11 }
 0x376   :  { %1446 = vmatmul.msk.bf16.gmra.mxu2 %vm237_vm0, %v550_v62  ;;  %1448 = vmatmul.msk.bf16.gmra.mxu0 %vm237_vm0, %v475_v0  ;;  %1697 = vrcp.f32 %v1009_v23 }
 0x377   :  { %1699 = vrcp.f32 %v790_v17 }
 0x378   :  { %1701 = vrcp.f32 %v2585_v3 }
 0x379   :  { %v1692_v21 = vpop.eup %1691  ;;  %v1012_v54 = vpop.xlane.xlu1 %1011 }
 0x37a   :  { %v793_v1 = vpop.xlane.xlu0 %792  ;;  %v1249_v6 = vpop.permute.xlu2 %1248  ;;  %v691_v63 = vmul.f32 %v1692_v21, %v2526_v61 }
 0x37b   :  { %1703 = vrcp.f32 %v793_v1  ;;  %1264 = vmatpush.bf16.msrb.mxu1 %v1249_v6  ;;  %v1694_v24 = vpop.eup %1693 }
 0x37c   :  { %v693_v11 = vpack.c.bf16 %v691_v63, %v690_v46  ;;  %v1696_v45 = vpop.eup %1695  ;;  %1705 = vrcp.f32 %v2590_v9  ;;  %v1020_v36 = vmul.f32 %v1694_v24, %v2347_v53 }
 0x37d   :  { %v1698_v51 = vpop.eup %1697  ;;  %1707 = vrcp.f32 %v2570_v16  ;;  %v908_v3 = vmul.f32 %v1696_v45, %v2454_v26 }
 0x37e   :  { %1450 = vmatmul.msk.bf16.gmra.mxu3 %vm237_vm0, %v693_v11  ;;  %v1700_v23 = vpop.eup %1699  ;;  %v1021_v25 = vmul.f32 %v1698_v51, %v2471_v19  ;;  %1709 = vrcp.f32 %v2600_v12 }
 0x37f   :  { %v1702_v49 = vpop.eup %1701  ;;  %v800_v58 = vmul.f32 %v1700_v23, %v2511_v43  ;;  %1711 = vrcp.f32 %v1012_v54 }
 0x380   :  { %v909_v13 = vmul.f32 %v1702_v49, %v2444_v18  ;;  %v1024_v8 = vpack.c.bf16 %v1021_v25, %v1020_v36 }
 0x381   :  { %v1704_v27 = vpop.eup %1703  ;;  %v1125_v61 = vpop.xlane.xlu1 %1124 }
 0x382   :  { %v801_v15 = vmul.f32 %v1704_v27, %v2537_v20  ;;  %v1706_v28 = vpop.eup %1705  ;;  %v912_v9 = vpack.c.bf16 %v909_v13, %v908_v3  ;;  %v903_v29 = vpop.xlane.xlu0 %902 }
 0x383   :  { %v1708_v26 = vpop.eup %1707  ;;  %v1131_v19 = vmul.f32 %v1706_v28, %v2456_v10  ;;  %1713 = vrcp.f32 %v903_v29 }
 0x384   :  { %v803_v5 = vpack.c.bf16 %v801_v15, %v800_v58  ;;  %1715 = vrcp.f32 %v900_v38  ;;  %v1130_v18 = vmul.f32 %v1708_v26, %v2421_v14  ;;  %v1710_v43 = vpop.eup %1709 }
 0x385   :  { %v1712_v16 = vpop.eup %1711  ;;  %v1241_v14 = vmul.f32 %v1710_v43, %v2497_v41 }
 0x386   :  { %1452 = vmatmul.msk.bf16.gmra.mxu1 %vm237_vm0, %v803_v5  ;;  %1453 = vmatmul.msk.bf16.vlgmr.msra.gmra.mxu2 %vm237_vm0, %v912_v9  ;;  %v1134_v20 = vpack.c.bf16 %v1131_v19, %v1130_v18  ;;  %v1022_v10 = vmul.f32 %v1712_v16, %v2535_v47 }
 0x387   :  { %1455 = vmatmul.msk.bf16.vlgmr.msra.gmra.mxu0 %vm237_vm0, %v1024_v8 }
 0x389   :  { %v1015_v53 = vpop.xlane.xlu1 %1014  ;;  %v1714_v12 = vpop.eup %1713 }
 0x38a   :  { %1717 = vrcp.f32 %v1015_v53  ;;  %v1716_v55 = vpop.eup %1715  ;;  %v911_v17 = vmul.f32 %v1714_v12, %v2546_v59 }
 0x38b   :  { %1719 = vrcp.f32 %v2574_v48  ;;  %v910_v7 = vmul.f32 %v1716_v55, %v2524_v42 }
 0x38c   :  { %1721 = vrcp.f32 %v1125_v61 }
 0x38d   :  { %v913_v56 = vpack.c.bf16 %v911_v17, %v910_v7 }
 0x38e   :  { %1457 = vmatmul.msk.bf16.vlgmr.msrb.gmra.mxu3 %vm237_vm0, %v1134_v20 }
 0x390   :  { %v1718_v35 = vpop.eup %1717 }
 0x391   :  { %v1023_v52 = vmul.f32 %v1718_v35, %v2557_v4  ;;  %v1720_v60 = vpop.eup %1719 }
 0x392   :  { %v1240_v48 = vmul.f32 %v1720_v60, %v2427_v31  ;;  %v1722_v59 = vpop.eup %1721  ;;  %v1232_v31 = vpop.xlane.xlu1 %1231 }
 0x393   :  { %v1025_v50 = vpack.c.bf16 %v1023_v52, %v1022_v10  ;;  %v1133_v4 = vmul.f32 %v1722_v59, %v2544_v32 }
 0x394   :  { %v1244_v57 = vpack.c.bf16 %v1241_v14, %v1240_v48 }
 0x395   :  { %v1247_v38 = vpop.permute.xlu0 %1246 }
 0x396   :  { %1265 = vmatpush.bf16.msrb.mxu1 %v1247_v38  ;;  %1454 = vmatmul.msk.bf16.gmra.mxu2 %vm237_vm0, %v913_v56 }
 0x397   :  { %1456 = vmatmul.msk.bf16.gmra.mxu0 %vm237_vm0, %v1025_v50 }
 0x399   :  { %1459 = vmatmul.msk.bf16.vlgmr.msrb.gmra.mxu1 %vm237_vm0, %v1244_v57 }
 0x3b3   :  { %v1122_v47 = vpop.xlane.xlu2 %1121 }
 0x3b4   :  { %1723 = vrcp.f32 %v1122_v47 }
 0x3b5   :  { %1725 = vrcp.f32 %v1232_v31 }
 0x3ba   :  { %v1724_v41 = vpop.eup %1723 }
 0x3bb   :  { %v1132_v42 = vmul.f32 %v1724_v41, %v2579_v34  ;;  %v1726_v37 = vpop.eup %1725 }
 0x3bc   :  { %v1242_v30 = vmul.f32 %v1726_v37, %v2564_v44 }
 0x3bd   :  { %v1135_v2 = vpack.c.bf16 %v1133_v4, %v1132_v42  ;;  %v1535_v42 = vld [vmem:[%s2672_s11] ss:$0 sm:$0xff] }
 0x3bf   :  { %1458 = vmatmul.msk.bf16.gmra.mxu3 %vm237_vm0, %v1135_v2 }
 0x3c0   :  { %v1235_v39 = vpop.xlane.xlu0 %1234 }
 0x3c1   :  { %1727 = vrcp.f32 %v1235_v39 }
 0x3c3   :  { %v825_v1 = vpop.f32.mrf.mxu1 }
 0x3c7   :  { %v1728_v33 = vpop.eup %1727 }
 0x3c8   :  { %v1243_v0 = vmul.f32 %v1728_v33, %v2588_v22 }
 0x3ca   :  { %v1245_v62 = vpack.c.bf16 %v1243_v0, %v1242_v30 }
 0x3cb   :  { %v827_v24 = vpop.f32.mrf.mxu1 }
 0x3cc   :  { %1460 = vmatmul.msk.bf16.gmra.mxu1 %vm237_vm0, %v1245_v62 }
 0x3d1   :  { %v715_v21 = vpop.f32.mrf.mxu3 }
 0x3d9   :  { %v717_v6 = vpop.f32.mrf.mxu3 }
 0x3e1   :  { %v582_v40 = vpop.f32.mrf.mxu2 }
 0x3e3   :  { %v609_v34 = vpop.f32.mrf.mxu0 }
 0x3e4   :  { %v610_v26 = vadd.f32 %v609_v34, %v582_v40  ;;  %v1289_v34 = vld [vmem:[%s2662_s1] sm:$0x3]  ;;  %s1350_s1 = sshll.u32 %s1875_s27, 4  ;;  %s1351_s1 = int_to_ptr.vmem [resolvable:$true] %s1350_s1 }
 0x3e6   :  { %v725_v20 = vadd.f32 %v715_v21, %v610_v26  ;;  %v1316_v21 = vld [vmem:[#allocation8 + $0x18] sm:$0xff] }
 0x3e8   :  { %v835_v52 = vadd.f32 %v825_v1, %v725_v20  ;;  %v1313_v1 = vld [vmem:[#allocation8] sm:$0xff] }
 0x3e9   :  { %v584_v32 = vpop.f32.mrf.mxu2 }
 0x3eb   :  { %v611_v54 = vpop.f32.mrf.mxu0 }
 0x3ec   :  { %v612_v5 = vadd.f32 %v611_v54, %v584_v32  ;;  %v1315_v32 = vld [vmem:[#allocation8 + $0x10] sm:$0xff]  ;;  %v1314_v54 = vld [vmem:[#allocation8 + $0x8] sm:$0xff] }
 0x3ee   :  { %v726_v18 = vadd.f32 %v717_v6, %v612_v5 }
 0x3f0   :  { %v836_v35 = vadd.f32 %v827_v24, %v726_v18 }
 0x3f3   :  { %v614_v63 = vpop.f32.mrf.mxu0 }
 0x3f9   :  { %v587_v46 = vpop.f32.mrf.mxu2 }
 0x3fa   :  { %v615_v28 = vadd.f32 %v614_v63, %v587_v46  ;;  %v1536_v46 = vld [vmem:[%s2674_s13] ss:$0 sm:$0xff] }
 0x3fb   :  { %v616_v51 = vpop.f32.mrf.mxu0 }
 0x401   :  { %v720_v11 = vpop.f32.mrf.mxu3  ;;  %v589_v45 = vpop.f32.mrf.mxu2 }
 0x402   :  { %v617_v9 = vadd.f32 %v616_v51, %v589_v45  ;;  %v727_v19 = vadd.f32 %v720_v11, %v615_v28 }
 0x403   :  { %v830_v23 = vpop.f32.mrf.mxu1 }
 0x404   :  { %v1047_v22 = vpop.f32.mrf.mxu0  ;;  %v837_v16 = vadd.f32 %v830_v23, %v727_v19 }
 0x409   :  { %v722_v44 = vpop.f32.mrf.mxu3  ;;  %v937_v49 = vpop.f32.mrf.mxu2 }
 0x40a   :  { %v728_v53 = vadd.f32 %v722_v44, %v617_v9  ;;  %v947_v50 = vadd.f32 %v937_v49, %v835_v52 }
 0x40b   :  { %v832_v27 = vpop.f32.mrf.mxu1 }
 0x40c   :  { %v1049_v58 = vpop.f32.mrf.mxu0  ;;  %v838_v12 = vadd.f32 %v832_v27, %v728_v53  ;;  %v1057_v41 = vadd.f32 %v1047_v22, %v947_v50 }
 0x411   :  { %v1157_v3 = vpop.f32.mrf.mxu3  ;;  %v939_v25 = vpop.f32.mrf.mxu2 }
 0x412   :  { %v948_v60 = vadd.f32 %v939_v25, %v836_v35  ;;  %v1167_v39 = vadd.f32 %v1157_v3, %v1057_v41 }
 0x414   :  { %v1052_v8 = vpop.f32.mrf.mxu0  ;;  %v1058_v56 = vadd.f32 %v1049_v58, %v948_v60 }
 0x416   :  { %v1267_v61 = vpop.f32.mrf.mxu1 }
 0x417   :  { %v1277_v30 = vadd.f32 %v1267_v61, %v1167_v39 }
 0x419   :  { %v1159_v15 = vpop.f32.mrf.mxu3  ;;  %v942_v36 = vpop.f32.mrf.mxu2  ;;  %v1285_v40 = vadd.f32 %v1535_v42, %v1277_v30 }
 0x41a   :  { %v949_v17 = vadd.f32 %v942_v36, %v837_v16  ;;  %v1168_v4 = vadd.f32 %v1159_v15, %v1058_v56 }
 0x41c   :  { %v1054_v14 = vpop.f32.mrf.mxu0  ;;  %v1059_v48 = vadd.f32 %v1052_v8, %v949_v17 }
 0x41e   :  { %v1269_v13 = vpop.f32.mrf.mxu1 }
 0x41f   :  { %v1278_v37 = vadd.f32 %v1269_v13, %v1168_v4 }
 0x421   :  { %v944_v43 = vpop.f32.mrf.mxu2  ;;  %v1286_v62 = vadd.f32 %v1535_v42, %v1278_v37 }
 0x422   :  { %v950_v10 = vadd.f32 %v944_v43, %v838_v12 }
 0x424   :  { %v1060_v38 = vadd.f32 %v1054_v14, %v950_v10 }
 0x442   :  { %v1162_v29 = vpop.f32.mrf.mxu3 }
 0x443   :  { %v1169_v57 = vadd.f32 %v1162_v29, %v1059_v48 }
 0x449   :  { %v1272_v55 = vpop.f32.mrf.mxu1 }
 0x44a   :  { %v1164_v7 = vpop.f32.mrf.mxu3  ;;  %v1279_v31 = vadd.f32 %v1272_v55, %v1169_v57 }
 0x44b   :  { %v1170_v47 = vadd.f32 %v1164_v7, %v1060_v38 }
 0x44c   :  { %v1287_v0 = vadd.f32 %v1535_v42, %v1279_v31 }
 0x451   :  { %v1274_v59 = vpop.f32.mrf.mxu1 }
 0x452   :  { %v1280_v2 = vadd.f32 %v1274_v59, %v1170_v47 }
 0x454   :  { %v1288_v33 = vadd.f32 %v1535_v42, %v1280_v2 }
 0x456   :  { %1305 = vmatpush.msrb.mxu2 %v1288_v33 }
 0x458   :  { %1306 = vmatpush.msrb.mxu2 %v1287_v0 }
 0x45a   :  { %1307 = vmatpush.msrb.mxu2 %v1286_v62 }
 0x45c   :  { %1308 = vmatpush.msrb.mxu2 %v1285_v40 }
 0x45d   :  { %1461 = vmatmul.msk.f32.vlgmr.msrb.gmra.mxu2 %vm237_vm0, %v1289_v34 }
 0x45e   :  { %1336 = vmatpush.msra.mxu2 %v1316_v21 }
 0x460   :  { %1337 = vmatpush.msra.mxu2 %v1315_v32 }
 0x462   :  { %1338 = vmatpush.msra.mxu2 %v1314_v54 }
 0x464   :  { %1339 = vmatpush.msra.mxu2 %v1313_v1 }
 0x4e0   :  { %v1310_v6 = vpop.f32.mrf.mxu2 }
 0x4e1   :  { %1462 = vmatmul.msk.f32.vlgmr.msra.gmra.mxu2 %vm237_vm0, %v1310_v6 }
 0x564   :  { %v1341_v63 = vpop.f32.mrf.mxu2 }
 0x565   :  { %v1342_v24 = vadd.f32 %v1536_v46, %v1341_v63 }
 0x567   :  { %1344 = vst [vmem:[#allocation10] sm:$0x3] %v1342_v24 }
 0x568   :  { %1355 = dma.vmem_to_hbm [thread:$0]  %s1351_s1, 32, %s1353_s29, [#allocation4]  }
 0x569   :  { %1855 = dma.done.wait [#allocation4], 32  }
 0x56a   :  { %1856 = vsyncadd [#allocation4], 4294967264 }
 0x56b   :  { %1360 = vsyncpa [#allocation3], 1 }
 0x56c   :  { %1361 = vsyncpa [#allocation6], 1 }
 0x56d   :  { %1362 = vsyncpa [#allocation9], 1 }
 0x56e   :  { %1363 = vsyncpa [#allocation4], 1 }

</bundles_post_ra>
